<compile_context>
chip_gen: v5e
topology: v5e:2x2
jax: 0.10.0
libtpu: 0.0.40
codegen_flags: <defaults>
</compile_context>

<pallas_src>
import numpy as np
import jax
import jax.numpy as jnp
from jax.experimental import pallas as pl
from jax.experimental.pallas import tpu as pltpu

# ---------------------------------------------------------------------------
# Model hyper-parameters: SigNet(in_channels, out_dimension, sig_depth, ...)
# ---------------------------------------------------------------------------
IN_CHANNELS = 4
OUT_DIM = 6
SIG_DEPTH = 3          # kernel below is specialized for depth == 3
INCLUDE_TIME = True    # Augment adds a time channel -> C_aug = in_channels + 1
KERNEL_SIZE = 1        # Augment(kernel_size=1, layer_sizes=()): no conv, no truncation
DROPOUT_P = 0.0        # nn.Dropout(p=0) is the identity

C_AUG = IN_CHANNELS + (1 if INCLUDE_TIME else 0)
C3 = C_AUG ** 3
SIG_CHANNELS = C_AUG + C_AUG ** 2 + C3   # = signatory.signature_channels(C_AUG, 3)

OUT_PAD = 128          # lane-dense epilogue: pad Linear output lanes to 128

# Batch tiling: TB=512 amortizes the ~0.35 us/grid-step overhead; mid-size
# batches still get >= 2 grid steps so v7x's two TensorCores are both used.
MAX_BATCH_TILE = 512
MIN_DUAL_CORE_BATCH = 16

ONE_THIRD = np.float32(1.0 / 3.0)
_HIGHEST = jax.lax.Precision.HIGHEST


# ---------------------------------------------------------------------------
# Kernel
# ---------------------------------------------------------------------------
def signet_kernel(d_ref, e_ref, w1_ref, w2_ref, w3_ref, b_ref, o_ref):
    """Fused depth-3 signature (Chen recursion) + Linear for one batch tile.

    d_ref : (L, TB, 2C)        increments split as [bf16(d) | d - bf16(d)]
    e_ref : (3, 2C, C^3)       constant lane-expansion matrices (0/1, rows
                               duplicated for the hi/lo halves):
                                 [0] -> d[k], [1] -> d[j], [2] -> d[i]
                               on the flattening p = k*C^2 + j*C + i
    w1_ref: (2C,  OUT_PAD)     level-1 Linear weight, stacked twice (hi|lo)
    w2_ref: (C^3, OUT_PAD)     level-2 weight in rows p < C^2, zeros elsewhere
                               (consumed by the REPLICATED s2t state directly)
    w3_ref: (C^3, OUT_PAD)     level-3 weight, rows permuted to p = k*C^2+j*C+i
    b_ref : (1, OUT_PAD)
    o_ref : (TB, OUT_PAD)
    """
    L, TB, C2 = d_ref.shape
    C = C2 // 2
    C3l = C * C * C

    dcat = d_ref[...]                                  # (L, TB, 2C) f32
    e = e_ref[...]                                     # (3, 2C, C^3)
    dflat = dcat.reshape(L * TB, C2)                   # relayout-free (TB % 8 == 0)

    def expand(m):
        # (L*TB, 2C) @ (2C, C^3) on the MXU: one default bf16 pass.  The hi
        # half is exactly bf16, the lo half carries the f32 residual, and the
        # 0/1 weights sum them -> exact replication of d to ~1e-6, off the
        # serial chain and with no XLU concats/broadcasts.
        return jnp.dot(dflat, e[m],
                       preferred_element_type=jnp.float32).reshape(L, TB, C3l)

    at_all = expand(0)        # d[k]   at lane p = k*C^2 + j*C + i
    jt_all = expand(1)        # d[j]
    it_all = expand(2)        # d[i]

    # ---- t = 0 closed forms (zero prior state) -----------------------------
    s1c = dcat[0]                                   # (TB, 2C)  [sum d_hi | sum d_lo]
    s1t3 = it_all[0]                                # (TB, C^3) S1[i] replicated
    s2t = 0.5 * (jt_all[0] * it_all[0])             # (TB, C^3) S2[i,j] = d[i]d[j]/2 replicated
    s3 = ONE_THIRD * (s2t * at_all[0])              # (TB, C^3) S3[i,j,k] = d[i]d[j]d[k]/6

    # ---- Chen recursion: pure VALU FMAs on replicated state (no XLU) -------
    for t in range(1, L):                           # static unroll; L is small
        at, jt, it = at_all[t], jt_all[t], it_all[t]
        jh = 0.5 * jt                               # d[j]/2
        ja_h = jh * at                              # d[j]d[k]/2
        ji_h = jh * it                              # d[i]d[j]/2
        # level 3 (OLD s2t, s1t3): S3 += S2 d[k] + S1 d[j]d[k]/2 + d^3/6
        s3 = s3 + s2t * at + s1t3 * ja_h + ONE_THIRD * (ji_h * at)
        # level 2 (OLD s1t3):      S2 += S1 d[j] + d[i]d[j]/2
        s2t = s2t + s1t3 * jt + ji_h
        # level 1 (replicated + [hi|lo] accumulator for the epilogue)
        s1t3 = s1t3 + it
        s1c = s1c + dcat[t]
    # TODO(synk): if the stream length grows large, move it onto an
    # "arbitrary" grid axis with the state held in VMEM scratch instead of
    # this static unroll.

    # ---- lane-dense fused Linear epilogue (Dropout(p=0) is the identity) ---
    # s2t is replicated C times along lanes; w2_ref is nonzero only in its
    # first C^2 rows, so each S2[i,j] is counted exactly once.
    acc = jnp.dot(s1c, w1_ref[...], preferred_element_type=jnp.float32,
                  precision=_HIGHEST)
    acc = acc + jnp.dot(s2t, w2_ref[...], preferred_element_type=jnp.float32,
                        precision=_HIGHEST)
    acc = acc + jnp.dot(s3, w3_ref[...], preferred_element_type=jnp.float32,
                        precision=_HIGHEST)
    o_ref[...] = acc + b_ref[...]


# ---------------------------------------------------------------------------
# Wrapper helpers
# ---------------------------------------------------------------------------
def _round_up(x, m):
    return ((x + m - 1) // m) * m


def _expansion_matrices():
    """Constant 0/1 expansion matrices (3, 2C, C^3) for the MXU.

    Row block 0..C-1 acts on the bf16 'hi' half of the increments, rows
    C..2C-1 (identical) on the f32 residual 'lo' half, so a single default-
    precision MXU pass reproduces d exactly (to ~1e-6)."""
    C = C_AUG
    p = np.arange(C ** 3)
    idx = np.stack([p // (C * C), (p // C) % C, p % C])   # k, j, i
    c = np.arange(C)[:, None]
    mats = []
    for m in range(3):
        em = (c == idx[m][None, :]).astype(np.float32)    # (C, C^3)
        mats.append(np.concatenate([em, em], axis=0))     # (2C, C^3)
    return jnp.asarray(np.stack(mats))                    # (3, 2C, C^3)


def _prepare_weights(weight, bias):
    """torch Linear params -> kernel weights.

    weight: (OUT_DIM, SIG_CHANNELS) with signatory's flattening (LAST path
    index fastest).  Rows are permuted to the kernel's internal flattening
    (FIRST path index fastest), columns zero-padded to OUT_PAD so the
    epilogue store is lane-dense, the level-1 weight is stacked twice for the
    [hi|lo] accumulator, and the level-2 weight is embedded in the first C^2
    rows of a C^3-row matrix (to consume the replicated s2t state directly).
    """
    C = C_AUG
    wt = weight.T.astype(jnp.float32)                                  # (SIG_CH, OUT)
    pad = ((0, 0), (0, OUT_PAD - OUT_DIM))
    w1 = jnp.pad(wt[:C], pad)                                          # (C, OUT_PAD)
    w1d = jnp.concatenate([w1, w1], axis=0)                            # (2C, OUT_PAD)
    w2 = wt[C:C + C * C].reshape(C, C, OUT_DIM)                        # [i, j, :]
    w2 = jnp.transpose(w2, (1, 0, 2)).reshape(C * C, OUT_DIM)          # row j*C+i
    w2r = jnp.zeros((C ** 3, OUT_PAD), jnp.float32).at[:C * C].set(jnp.pad(w2, pad))
    w3 = wt[C + C * C:].reshape(C, C, C, OUT_DIM)                      # [i, j, k, :]
    w3 = jnp.transpose(w3, (2, 1, 0, 3)).reshape(C ** 3, OUT_DIM)      # row k*C^2+j*C+i
    w3 = jnp.pad(w3, pad)                                              # (C^3, OUT_PAD)
    b2d = jnp.pad(bias.astype(jnp.float32), (0, OUT_PAD - OUT_DIM)).reshape(1, OUT_PAD)
    return w1d, w2r, w3, b2d


# ---------------------------------------------------------------------------
# Forward wrapper
# ---------------------------------------------------------------------------
def signet_forward(inp, weight, bias, *, basepoint=True):
    """SigNet.forward.  inp: (B, stream, IN_CHANNELS) f32; weight: (OUT_DIM, SIG_CHANNELS)."""
    B, Ls, _ = inp.shape
    if Ls <= 1:
        raise RuntimeError("Given an input with too short a stream to take the signature")

    # ---- signatory.Augment(layer_sizes=(), kernel_size=1, include_original=True,
    # ----                   include_time=True): pure channel concatenation.
    # TODO(synk): verify against signatory that the augmented channel order is
    # [original, time] and that the time channel is exactly linspace(0, 1, Ls).
    time = jnp.broadcast_to(
        jnp.linspace(0.0, 1.0, Ls, dtype=inp.dtype)[None, :, None], (B, Ls, 1))
    x = jnp.concatenate([inp, time], axis=-1)                          # (B, Ls, C_AUG)

    # ---- path increments; basepoint=True prepends the origin.
    if basepoint:
        x = jnp.concatenate([jnp.zeros((B, 1, C_AUG), x.dtype), x], axis=1)
    incr = (x[:, 1:, :] - x[:, :-1, :]).astype(jnp.float32)            # (B, L, C_AUG)
    L = incr.shape[1]

    # ---- batch tiling: big batches -> TB=512 tiles; mid-size batches -> >=2
    # grid steps (v7x dual TensorCore); tiny batches -> one 8-aligned block.
    if B >= MIN_DUAL_CORE_BATCH:
        n_tiles = max(2, -(-B // MAX_BATCH_TILE))
        TB = _round_up(-(-B // n_tiles), 8)
    else:
        TB = _round_up(max(B, 1), 8)
    B_pad = _round_up(B, TB)
    if B_pad != B:                       # zero-padded rows -> signature 0 -> bias only
        incr = jnp.concatenate(
            [incr, jnp.zeros((B_pad - B, L, C_AUG), jnp.float32)], axis=0)

    # hi/lo split so the in-kernel MXU expansions are exact in one bf16 pass.
    incr_hi = incr.astype(jnp.bfloat16).astype(jnp.float32)
    incr_lo = incr - incr_hi
    dcat = jnp.concatenate([incr_hi, incr_lo], axis=-1)                # (B_pad, L, 2C)
    dcat = jnp.transpose(dcat, (1, 0, 2))                              # (L, B_pad, 2C)

    e_mats = _expansion_matrices()                                     # (3, 2C, C^3)
    w1d, w2r, w3, b2d = _prepare_weights(weight, bias)

    out = pl.pallas_call(
        signet_kernel,
        out_shape=jax.ShapeDtypeStruct((B_pad, OUT_PAD), jnp.float32),
        grid=(B_pad // TB,),
        in_specs=[
            pl.BlockSpec((L, TB, 2 * C_AUG), lambda bb: (0, bb, 0)),
            pl.BlockSpec((3, 2 * C_AUG, C3), lambda bb: (0, 0, 0)),
            pl.BlockSpec((2 * C_AUG, OUT_PAD), lambda bb: (0, 0)),
            pl.BlockSpec((C3, OUT_PAD), lambda bb: (0, 0)),
            pl.BlockSpec((C3, OUT_PAD), lambda bb: (0, 0)),
            pl.BlockSpec((1, OUT_PAD), lambda bb: (0, 0)),
        ],
        out_specs=pl.BlockSpec((TB, OUT_PAD), lambda bb: (bb, 0)),
        compiler_params=pltpu.CompilerParams(
            dimension_semantics=("parallel",)),
    )(dcat, e_mats, w1d, w2r, w3, b2d)
    return out[:B, :OUT_DIM]


# ---------------------------------------------------------------------------
# Pure-JAX reference (dense tensor form of the same recursion) for validation.
# ---------------------------------------------------------------------------
def signet_reference(inp, weight, bias, *, basepoint=True):
    B, Ls, _ = inp.shape
    time = jnp.broadcast_to(
        jnp.linspace(0.0, 1.0, Ls, dtype=inp.dtype)[None, :, None], (B, Ls, 1))
    x = jnp.concatenate([inp, time], axis=-1)
    if basepoint:
        x = jnp.concatenate([jnp.zeros((B, 1, C_AUG), x.dtype), x], axis=1)
    d = (x[:, 1:, :] - x[:, :-1, :]).astype(jnp.float32)
    C = C_AUG
    s1 = jnp.zeros((B, C), jnp.float32)
    s2 = jnp.zeros((B, C, C), jnp.float32)
    s3 = jnp.zeros((B, C, C, C), jnp.float32)
    for t in range(d.shape[1]):
        dt = d[:, t]
        dd = dt[:, :, None] * dt[:, None, :]
        ddd = dd[:, :, :, None] * dt[:, None, None, :]
        s3 = (s3 + s2[..., None] * dt[:, None, None, :]
              + 0.5 * s1[:, :, None, None] * dd[:, None, :, :] + ddd / 6.0)
        s2 = s2 + s1[:, :, None] * dt[:, None, :] + 0.5 * dd
        s1 = s1 + dt
    sig = jnp.concatenate([s1, s2.reshape(B, -1), s3.reshape(B, -1)], axis=-1)
    return (jnp.dot(sig, weight.T.astype(jnp.float32),
                    precision=jax.lax.Precision.HIGHEST) + bias[None, :])


if __name__ == "__main__":
    key = jax.random.PRNGKey(0)
    k_x, k_w, k_b, k_x2 = jax.random.split(key, 4)
    B, Ls = 2, 8
    inp = jax.random.normal(k_x, (B, Ls, IN_CHANNELS), jnp.float32)
    # Deterministic synthetic parameters for nn.Linear(SIG_CHANNELS, OUT_DIM).
    weight = jax.random.normal(k_w, (OUT_DIM, SIG_CHANNELS), jnp.float32) * 0.05
    bias = jax.random.normal(k_b, (OUT_DIM,), jnp.float32) * 0.05

    out = jax.block_until_ready(signet_forward(inp, weight, bias, basepoint=True))
    ref = jax.block_until_ready(signet_reference(inp, weight, bias, basepoint=True))
    assert out.shape == (B, OUT_DIM)
    np.testing.assert_allclose(np.asarray(out), np.asarray(ref), rtol=2e-3, atol=2e-3)

    # Second config exercises batch padding, >=2 grid steps and odd tile sizes.
    B2, Ls2 = 37, 9
    inp2 = jax.random.normal(k_x2, (B2, Ls2, IN_CHANNELS), jnp.float32)
    out2 = jax.block_until_ready(signet_forward(inp2, weight, bias, basepoint=True))
    ref2 = jax.block_until_ready(signet_reference(inp2, weight, bias, basepoint=True))
    assert out2.shape == (B2, OUT_DIM)
    np.testing.assert_allclose(np.asarray(out2), np.asarray(ref2), rtol=2e-3, atol=2e-3)

    print("KERNEL_OK")
</pallas_src>

<mosaic_0001>
module attributes {stable_mosaic.version = 11 : i64} {
  func.func @signet_kernel(%arg0: i32, %arg1: memref<8x8x10xf32, #tpu.memory_space<vmem>>, %arg2: memref<3x10x125xf32, #tpu.memory_space<vmem>>, %arg3: memref<10x128xf32, #tpu.memory_space<vmem>>, %arg4: memref<125x128xf32, #tpu.memory_space<vmem>>, %arg5: memref<125x128xf32, #tpu.memory_space<vmem>>, %arg6: memref<1x128xf32, #tpu.memory_space<vmem>>, %arg7: memref<8x128xf32, #tpu.memory_space<vmem>>) attributes {dimension_semantics = [#tpu.dimension_semantics<parallel>], iteration_bounds = array<i64: 1>, scalar_prefetch = 0 : i64, scratch_operands = 0 : i64, tpu.core_type = #tpu.core_type<tc>, window_params = [{transform_indices = @transform_0, window_bounds = array<i64: 8, 8, 10>}, {pipeline_mode = #tpu.pipeline_mode<synchronous>, transform_indices = @transform_1, window_bounds = array<i64: 3, 10, 125>}, {pipeline_mode = #tpu.pipeline_mode<synchronous>, transform_indices = @transform_2, window_bounds = array<i64: 10, 128>}, {pipeline_mode = #tpu.pipeline_mode<synchronous>, transform_indices = @transform_3, window_bounds = array<i64: 125, 128>}, {pipeline_mode = #tpu.pipeline_mode<synchronous>, transform_indices = @transform_4, window_bounds = array<i64: 125, 128>}, {pipeline_mode = #tpu.pipeline_mode<synchronous>, transform_indices = @transform_5, window_bounds = array<i64: 1, 128>}, {transform_indices = @transform_6, window_bounds = array<i64: 8, 128>}]} {
    %c0 = arith.constant 0 : index
    %c0_0 = arith.constant 0 : index
    %c0_1 = arith.constant 0 : index
    %0 = vector.load %arg1[%c0, %c0_0, %c0_1] : memref<8x8x10xf32, #tpu.memory_space<vmem>>, vector<8x8x10xf32>
    %c0_2 = arith.constant 0 : index
    %c0_3 = arith.constant 0 : index
    %c0_4 = arith.constant 0 : index
    %1 = vector.load %arg2[%c0_2, %c0_3, %c0_4] : memref<3x10x125xf32, #tpu.memory_space<vmem>>, vector<3x10x125xf32>
    %2 = vector.shape_cast %0 : vector<8x8x10xf32> to vector<64x10xf32>
    %3 = vector.extract_strided_slice %1 {offsets = [0, 0, 0], sizes = [1, 10, 125], strides = [1, 1, 1]} : vector<3x10x125xf32> to vector<1x10x125xf32>
    %4 = vector.shape_cast %3 : vector<1x10x125xf32> to vector<10x125xf32>
    %cst = arith.constant dense<0.000000e+00> : vector<64x125xf32>
    %5 = tpu.matmul %2, %4, %cst {dimension_numbers = #tpu.dot_dimension_numbers<[1], [0], [0], [1], [0, 0, 1, 1], [], []>} : vector<64x10xf32>, vector<10x125xf32>, vector<64x125xf32> -> vector<64x125xf32>
    %6 = vector.shape_cast %5 : vector<64x125xf32> to vector<8x8x125xf32>
    %7 = vector.extract_strided_slice %1 {offsets = [1, 0, 0], sizes = [1, 10, 125], strides = [1, 1, 1]} : vector<3x10x125xf32> to vector<1x10x125xf32>
    %8 = vector.shape_cast %7 : vector<1x10x125xf32> to vector<10x125xf32>
    %cst_5 = arith.constant dense<0.000000e+00> : vector<64x125xf32>
    %9 = tpu.matmul %2, %8, %cst_5 {dimension_numbers = #tpu.dot_dimension_numbers<[1], [0], [0], [1], [0, 0, 1, 1], [], []>} : vector<64x10xf32>, vector<10x125xf32>, vector<64x125xf32> -> vector<64x125xf32>
    %10 = vector.shape_cast %9 : vector<64x125xf32> to vector<8x8x125xf32>
    %11 = vector.extract_strided_slice %1 {offsets = [2, 0, 0], sizes = [1, 10, 125], strides = [1, 1, 1]} : vector<3x10x125xf32> to vector<1x10x125xf32>
    %12 = vector.shape_cast %11 : vector<1x10x125xf32> to vector<10x125xf32>
    %cst_6 = arith.constant dense<0.000000e+00> : vector<64x125xf32>
    %13 = tpu.matmul %2, %12, %cst_6 {dimension_numbers = #tpu.dot_dimension_numbers<[1], [0], [0], [1], [0, 0, 1, 1], [], []>} : vector<64x10xf32>, vector<10x125xf32>, vector<64x125xf32> -> vector<64x125xf32>
    %14 = vector.shape_cast %13 : vector<64x125xf32> to vector<8x8x125xf32>
    %15 = vector.extract_strided_slice %0 {offsets = [0, 0, 0], sizes = [1, 8, 10], strides = [1, 1, 1]} : vector<8x8x10xf32> to vector<1x8x10xf32>
    %16 = vector.shape_cast %15 : vector<1x8x10xf32> to vector<8x10xf32>
    %17 = vector.extract_strided_slice %14 {offsets = [0, 0, 0], sizes = [1, 8, 125], strides = [1, 1, 1]} : vector<8x8x125xf32> to vector<1x8x125xf32>
    %18 = vector.shape_cast %17 : vector<1x8x125xf32> to vector<8x125xf32>
    %19 = vector.extract_strided_slice %10 {offsets = [0, 0, 0], sizes = [1, 8, 125], strides = [1, 1, 1]} : vector<8x8x125xf32> to vector<1x8x125xf32>
    %20 = vector.shape_cast %19 : vector<1x8x125xf32> to vector<8x125xf32>
    %21 = vector.extract_strided_slice %14 {offsets = [0, 0, 0], sizes = [1, 8, 125], strides = [1, 1, 1]} : vector<8x8x125xf32> to vector<1x8x125xf32>
    %22 = vector.shape_cast %21 : vector<1x8x125xf32> to vector<8x125xf32>
    %23 = arith.mulf %20, %22 : vector<8x125xf32>
    %cst_7 = arith.constant 5.000000e-01 : f32
    %24 = vector.broadcast %cst_7 : f32 to vector<8x125xf32>
    %25 = arith.mulf %24, %23 : vector<8x125xf32>
    %26 = vector.extract_strided_slice %6 {offsets = [0, 0, 0], sizes = [1, 8, 125], strides = [1, 1, 1]} : vector<8x8x125xf32> to vector<1x8x125xf32>
    %27 = vector.shape_cast %26 : vector<1x8x125xf32> to vector<8x125xf32>
    %28 = arith.mulf %25, %27 : vector<8x125xf32>
    %cst_8 = arith.constant 0.333333343 : f32
    %29 = vector.broadcast %cst_8 : f32 to vector<8x125xf32>
    %30 = arith.mulf %29, %28 : vector<8x125xf32>
    %31 = vector.extract_strided_slice %6 {offsets = [1, 0, 0], sizes = [1, 8, 125], strides = [1, 1, 1]} : vector<8x8x125xf32> to vector<1x8x125xf32>
    %32 = vector.shape_cast %31 : vector<1x8x125xf32> to vector<8x125xf32>
    %33 = vector.extract_strided_slice %10 {offsets = [1, 0, 0], sizes = [1, 8, 125], strides = [1, 1, 1]} : vector<8x8x125xf32> to vector<1x8x125xf32>
    %34 = vector.shape_cast %33 : vector<1x8x125xf32> to vector<8x125xf32>
    %35 = vector.extract_strided_slice %14 {offsets = [1, 0, 0], sizes = [1, 8, 125], strides = [1, 1, 1]} : vector<8x8x125xf32> to vector<1x8x125xf32>
    %36 = vector.shape_cast %35 : vector<1x8x125xf32> to vector<8x125xf32>
    %cst_9 = arith.constant 5.000000e-01 : f32
    %37 = vector.broadcast %cst_9 : f32 to vector<8x125xf32>
    %38 = arith.mulf %37, %34 : vector<8x125xf32>
    %39 = arith.mulf %38, %32 : vector<8x125xf32>
    %40 = arith.mulf %38, %36 : vector<8x125xf32>
    %41 = arith.mulf %25, %32 : vector<8x125xf32>
    %42 = arith.addf %30, %41 : vector<8x125xf32>
    %43 = arith.mulf %18, %39 : vector<8x125xf32>
    %44 = arith.addf %42, %43 : vector<8x125xf32>
    %45 = arith.mulf %40, %32 : vector<8x125xf32>
    %cst_10 = arith.constant 0.333333343 : f32
    %46 = vector.broadcast %cst_10 : f32 to vector<8x125xf32>
    %47 = arith.mulf %46, %45 : vector<8x125xf32>
    %48 = arith.addf %44, %47 : vector<8x125xf32>
    %49 = arith.mulf %18, %34 : vector<8x125xf32>
    %50 = arith.addf %25, %49 : vector<8x125xf32>
    %51 = arith.addf %50, %40 : vector<8x125xf32>
    %52 = arith.addf %18, %36 : vector<8x125xf32>
    %53 = vector.extract_strided_slice %0 {offsets = [1, 0, 0], sizes = [1, 8, 10], strides = [1, 1, 1]} : vector<8x8x10xf32> to vector<1x8x10xf32>
    %54 = vector.shape_cast %53 : vector<1x8x10xf32> to vector<8x10xf32>
    %55 = arith.addf %16, %54 : vector<8x10xf32>
    %56 = vector.extract_strided_slice %6 {offsets = [2, 0, 0], sizes = [1, 8, 125], strides = [1, 1, 1]} : vector<8x8x125xf32> to vector<1x8x125xf32>
    %57 = vector.shape_cast %56 : vector<1x8x125xf32> to vector<8x125xf32>
    %58 = vector.extract_strided_slice %10 {offsets = [2, 0, 0], sizes = [1, 8, 125], strides = [1, 1, 1]} : vector<8x8x125xf32> to vector<1x8x125xf32>
    %59 = vector.shape_cast %58 : vector<1x8x125xf32> to vector<8x125xf32>
    %60 = vector.extract_strided_slice %14 {offsets = [2, 0, 0], sizes = [1, 8, 125], strides = [1, 1, 1]} : vector<8x8x125xf32> to vector<1x8x125xf32>
    %61 = vector.shape_cast %60 : vector<1x8x125xf32> to vector<8x125xf32>
    %cst_11 = arith.constant 5.000000e-01 : f32
    %62 = vector.broadcast %cst_11 : f32 to vector<8x125xf32>
    %63 = arith.mulf %62, %59 : vector<8x125xf32>
    %64 = arith.mulf %63, %57 : vector<8x125xf32>
    %65 = arith.mulf %63, %61 : vector<8x125xf32>
    %66 = arith.mulf %51, %57 : vector<8x125xf32>
    %67 = arith.addf %48, %66 : vector<8x125xf32>
    %68 = arith.mulf %52, %64 : vector<8x125xf32>
    %69 = arith.addf %67, %68 : vector<8x125xf32>
    %70 = arith.mulf %65, %57 : vector<8x125xf32>
    %cst_12 = arith.constant 0.333333343 : f32
    %71 = vector.broadcast %cst_12 : f32 to vector<8x125xf32>
    %72 = arith.mulf %71, %70 : vector<8x125xf32>
    %73 = arith.addf %69, %72 : vector<8x125xf32>
    %74 = arith.mulf %52, %59 : vector<8x125xf32>
    %75 = arith.addf %51, %74 : vector<8x125xf32>
    %76 = arith.addf %75, %65 : vector<8x125xf32>
    %77 = arith.addf %52, %61 : vector<8x125xf32>
    %78 = vector.extract_strided_slice %0 {offsets = [2, 0, 0], sizes = [1, 8, 10], strides = [1, 1, 1]} : vector<8x8x10xf32> to vector<1x8x10xf32>
    %79 = vector.shape_cast %78 : vector<1x8x10xf32> to vector<8x10xf32>
    %80 = arith.addf %55, %79 : vector<8x10xf32>
    %81 = vector.extract_strided_slice %6 {offsets = [3, 0, 0], sizes = [1, 8, 125], strides = [1, 1, 1]} : vector<8x8x125xf32> to vector<1x8x125xf32>
    %82 = vector.shape_cast %81 : vector<1x8x125xf32> to vector<8x125xf32>
    %83 = vector.extract_strided_slice %10 {offsets = [3, 0, 0], sizes = [1, 8, 125], strides = [1, 1, 1]} : vector<8x8x125xf32> to vector<1x8x125xf32>
    %84 = vector.shape_cast %83 : vector<1x8x125xf32> to vector<8x125xf32>
    %85 = vector.extract_strided_slice %14 {offsets = [3, 0, 0], sizes = [1, 8, 125], strides = [1, 1, 1]} : vector<8x8x125xf32> to vector<1x8x125xf32>
    %86 = vector.shape_cast %85 : vector<1x8x125xf32> to vector<8x125xf32>
    %cst_13 = arith.constant 5.000000e-01 : f32
    %87 = vector.broadcast %cst_13 : f32 to vector<8x125xf32>
    %88 = arith.mulf %87, %84 : vector<8x125xf32>
    %89 = arith.mulf %88, %82 : vector<8x125xf32>
    %90 = arith.mulf %88, %86 : vector<8x125xf32>
    %91 = arith.mulf %76, %82 : vector<8x125xf32>
    %92 = arith.addf %73, %91 : vector<8x125xf32>
    %93 = arith.mulf %77, %89 : vector<8x125xf32>
    %94 = arith.addf %92, %93 : vector<8x125xf32>
    %95 = arith.mulf %90, %82 : vector<8x125xf32>
    %cst_14 = arith.constant 0.333333343 : f32
    %96 = vector.broadcast %cst_14 : f32 to vector<8x125xf32>
    %97 = arith.mulf %96, %95 : vector<8x125xf32>
    %98 = arith.addf %94, %97 : vector<8x125xf32>
    %99 = arith.mulf %77, %84 : vector<8x125xf32>
    %100 = arith.addf %76, %99 : vector<8x125xf32>
    %101 = arith.addf %100, %90 : vector<8x125xf32>
    %102 = arith.addf %77, %86 : vector<8x125xf32>
    %103 = vector.extract_strided_slice %0 {offsets = [3, 0, 0], sizes = [1, 8, 10], strides = [1, 1, 1]} : vector<8x8x10xf32> to vector<1x8x10xf32>
    %104 = vector.shape_cast %103 : vector<1x8x10xf32> to vector<8x10xf32>
    %105 = arith.addf %80, %104 : vector<8x10xf32>
    %106 = vector.extract_strided_slice %6 {offsets = [4, 0, 0], sizes = [1, 8, 125], strides = [1, 1, 1]} : vector<8x8x125xf32> to vector<1x8x125xf32>
    %107 = vector.shape_cast %106 : vector<1x8x125xf32> to vector<8x125xf32>
    %108 = vector.extract_strided_slice %10 {offsets = [4, 0, 0], sizes = [1, 8, 125], strides = [1, 1, 1]} : vector<8x8x125xf32> to vector<1x8x125xf32>
    %109 = vector.shape_cast %108 : vector<1x8x125xf32> to vector<8x125xf32>
    %110 = vector.extract_strided_slice %14 {offsets = [4, 0, 0], sizes = [1, 8, 125], strides = [1, 1, 1]} : vector<8x8x125xf32> to vector<1x8x125xf32>
    %111 = vector.shape_cast %110 : vector<1x8x125xf32> to vector<8x125xf32>
    %cst_15 = arith.constant 5.000000e-01 : f32
    %112 = vector.broadcast %cst_15 : f32 to vector<8x125xf32>
    %113 = arith.mulf %112, %109 : vector<8x125xf32>
    %114 = arith.mulf %113, %107 : vector<8x125xf32>
    %115 = arith.mulf %113, %111 : vector<8x125xf32>
    %116 = arith.mulf %101, %107 : vector<8x125xf32>
    %117 = arith.addf %98, %116 : vector<8x125xf32>
    %118 = arith.mulf %102, %114 : vector<8x125xf32>
    %119 = arith.addf %117, %118 : vector<8x125xf32>
    %120 = arith.mulf %115, %107 : vector<8x125xf32>
    %cst_16 = arith.constant 0.333333343 : f32
    %121 = vector.broadcast %cst_16 : f32 to vector<8x125xf32>
    %122 = arith.mulf %121, %120 : vector<8x125xf32>
    %123 = arith.addf %119, %122 : vector<8x125xf32>
    %124 = arith.mulf %102, %109 : vector<8x125xf32>
    %125 = arith.addf %101, %124 : vector<8x125xf32>
    %126 = arith.addf %125, %115 : vector<8x125xf32>
    %127 = arith.addf %102, %111 : vector<8x125xf32>
    %128 = vector.extract_strided_slice %0 {offsets = [4, 0, 0], sizes = [1, 8, 10], strides = [1, 1, 1]} : vector<8x8x10xf32> to vector<1x8x10xf32>
    %129 = vector.shape_cast %128 : vector<1x8x10xf32> to vector<8x10xf32>
    %130 = arith.addf %105, %129 : vector<8x10xf32>
    %131 = vector.extract_strided_slice %6 {offsets = [5, 0, 0], sizes = [1, 8, 125], strides = [1, 1, 1]} : vector<8x8x125xf32> to vector<1x8x125xf32>
    %132 = vector.shape_cast %131 : vector<1x8x125xf32> to vector<8x125xf32>
    %133 = vector.extract_strided_slice %10 {offsets = [5, 0, 0], sizes = [1, 8, 125], strides = [1, 1, 1]} : vector<8x8x125xf32> to vector<1x8x125xf32>
    %134 = vector.shape_cast %133 : vector<1x8x125xf32> to vector<8x125xf32>
    %135 = vector.extract_strided_slice %14 {offsets = [5, 0, 0], sizes = [1, 8, 125], strides = [1, 1, 1]} : vector<8x8x125xf32> to vector<1x8x125xf32>
    %136 = vector.shape_cast %135 : vector<1x8x125xf32> to vector<8x125xf32>
    %cst_17 = arith.constant 5.000000e-01 : f32
    %137 = vector.broadcast %cst_17 : f32 to vector<8x125xf32>
    %138 = arith.mulf %137, %134 : vector<8x125xf32>
    %139 = arith.mulf %138, %132 : vector<8x125xf32>
    %140 = arith.mulf %138, %136 : vector<8x125xf32>
    %141 = arith.mulf %126, %132 : vector<8x125xf32>
    %142 = arith.addf %123, %141 : vector<8x125xf32>
    %143 = arith.mulf %127, %139 : vector<8x125xf32>
    %144 = arith.addf %142, %143 : vector<8x125xf32>
    %145 = arith.mulf %140, %132 : vector<8x125xf32>
    %cst_18 = arith.constant 0.333333343 : f32
    %146 = vector.broadcast %cst_18 : f32 to vector<8x125xf32>
    %147 = arith.mulf %146, %145 : vector<8x125xf32>
    %148 = arith.addf %144, %147 : vector<8x125xf32>
    %149 = arith.mulf %127, %134 : vector<8x125xf32>
    %150 = arith.addf %126, %149 : vector<8x125xf32>
    %151 = arith.addf %150, %140 : vector<8x125xf32>
    %152 = arith.addf %127, %136 : vector<8x125xf32>
    %153 = vector.extract_strided_slice %0 {offsets = [5, 0, 0], sizes = [1, 8, 10], strides = [1, 1, 1]} : vector<8x8x10xf32> to vector<1x8x10xf32>
    %154 = vector.shape_cast %153 : vector<1x8x10xf32> to vector<8x10xf32>
    %155 = arith.addf %130, %154 : vector<8x10xf32>
    %156 = vector.extract_strided_slice %6 {offsets = [6, 0, 0], sizes = [1, 8, 125], strides = [1, 1, 1]} : vector<8x8x125xf32> to vector<1x8x125xf32>
    %157 = vector.shape_cast %156 : vector<1x8x125xf32> to vector<8x125xf32>
    %158 = vector.extract_strided_slice %10 {offsets = [6, 0, 0], sizes = [1, 8, 125], strides = [1, 1, 1]} : vector<8x8x125xf32> to vector<1x8x125xf32>
    %159 = vector.shape_cast %158 : vector<1x8x125xf32> to vector<8x125xf32>
    %160 = vector.extract_strided_slice %14 {offsets = [6, 0, 0], sizes = [1, 8, 125], strides = [1, 1, 1]} : vector<8x8x125xf32> to vector<1x8x125xf32>
    %161 = vector.shape_cast %160 : vector<1x8x125xf32> to vector<8x125xf32>
    %cst_19 = arith.constant 5.000000e-01 : f32
    %162 = vector.broadcast %cst_19 : f32 to vector<8x125xf32>
    %163 = arith.mulf %162, %159 : vector<8x125xf32>
    %164 = arith.mulf %163, %157 : vector<8x125xf32>
    %165 = arith.mulf %163, %161 : vector<8x125xf32>
    %166 = arith.mulf %151, %157 : vector<8x125xf32>
    %167 = arith.addf %148, %166 : vector<8x125xf32>
    %168 = arith.mulf %152, %164 : vector<8x125xf32>
    %169 = arith.addf %167, %168 : vector<8x125xf32>
    %170 = arith.mulf %165, %157 : vector<8x125xf32>
    %cst_20 = arith.constant 0.333333343 : f32
    %171 = vector.broadcast %cst_20 : f32 to vector<8x125xf32>
    %172 = arith.mulf %171, %170 : vector<8x125xf32>
    %173 = arith.addf %169, %172 : vector<8x125xf32>
    %174 = arith.mulf %152, %159 : vector<8x125xf32>
    %175 = arith.addf %151, %174 : vector<8x125xf32>
    %176 = arith.addf %175, %165 : vector<8x125xf32>
    %177 = arith.addf %152, %161 : vector<8x125xf32>
    %178 = vector.extract_strided_slice %0 {offsets = [6, 0, 0], sizes = [1, 8, 10], strides = [1, 1, 1]} : vector<8x8x10xf32> to vector<1x8x10xf32>
    %179 = vector.shape_cast %178 : vector<1x8x10xf32> to vector<8x10xf32>
    %180 = arith.addf %155, %179 : vector<8x10xf32>
    %181 = vector.extract_strided_slice %6 {offsets = [7, 0, 0], sizes = [1, 8, 125], strides = [1, 1, 1]} : vector<8x8x125xf32> to vector<1x8x125xf32>
    %182 = vector.shape_cast %181 : vector<1x8x125xf32> to vector<8x125xf32>
    %183 = vector.extract_strided_slice %10 {offsets = [7, 0, 0], sizes = [1, 8, 125], strides = [1, 1, 1]} : vector<8x8x125xf32> to vector<1x8x125xf32>
    %184 = vector.shape_cast %183 : vector<1x8x125xf32> to vector<8x125xf32>
    %185 = vector.extract_strided_slice %14 {offsets = [7, 0, 0], sizes = [1, 8, 125], strides = [1, 1, 1]} : vector<8x8x125xf32> to vector<1x8x125xf32>
    %186 = vector.shape_cast %185 : vector<1x8x125xf32> to vector<8x125xf32>
    %cst_21 = arith.constant 5.000000e-01 : f32
    %187 = vector.broadcast %cst_21 : f32 to vector<8x125xf32>
    %188 = arith.mulf %187, %184 : vector<8x125xf32>
    %189 = arith.mulf %188, %182 : vector<8x125xf32>
    %190 = arith.mulf %188, %186 : vector<8x125xf32>
    %191 = arith.mulf %176, %182 : vector<8x125xf32>
    %192 = arith.addf %173, %191 : vector<8x125xf32>
    %193 = arith.mulf %177, %189 : vector<8x125xf32>
    %194 = arith.addf %192, %193 : vector<8x125xf32>
    %195 = arith.mulf %190, %182 : vector<8x125xf32>
    %cst_22 = arith.constant 0.333333343 : f32
    %196 = vector.broadcast %cst_22 : f32 to vector<8x125xf32>
    %197 = arith.mulf %196, %195 : vector<8x125xf32>
    %198 = arith.addf %194, %197 : vector<8x125xf32>
    %199 = arith.mulf %177, %184 : vector<8x125xf32>
    %200 = arith.addf %176, %199 : vector<8x125xf32>
    %201 = arith.addf %200, %190 : vector<8x125xf32>
    %202 = vector.extract_strided_slice %0 {offsets = [7, 0, 0], sizes = [1, 8, 10], strides = [1, 1, 1]} : vector<8x8x10xf32> to vector<1x8x10xf32>
    %203 = vector.shape_cast %202 : vector<1x8x10xf32> to vector<8x10xf32>
    %204 = arith.addf %180, %203 : vector<8x10xf32>
    %c0_23 = arith.constant 0 : index
    %c0_24 = arith.constant 0 : index
    %205 = vector.load %arg3[%c0_23, %c0_24] : memref<10x128xf32, #tpu.memory_space<vmem>>, vector<10x128xf32>
    %cst_25 = arith.constant dense<0.000000e+00> : vector<8x128xf32>
    %206 = tpu.matmul %204, %205, %cst_25 {dimension_numbers = #tpu.dot_dimension_numbers<[1], [0], [0], [1], [0, 0, 1, 1], [], []>, precision = #tpu.contract_precision<fp32>} : vector<8x10xf32>, vector<10x128xf32>, vector<8x128xf32> -> vector<8x128xf32>
    %c0_26 = arith.constant 0 : index
    %c0_27 = arith.constant 0 : index
    %207 = vector.load %arg4[%c0_26, %c0_27] : memref<125x128xf32, #tpu.memory_space<vmem>>, vector<125x128xf32>
    %cst_28 = arith.constant dense<0.000000e+00> : vector<8x128xf32>
    %208 = tpu.matmul %201, %207, %cst_28 {dimension_numbers = #tpu.dot_dimension_numbers<[1], [0], [0], [1], [0, 0, 1, 1], [], []>, precision = #tpu.contract_precision<fp32>} : vector<8x125xf32>, vector<125x128xf32>, vector<8x128xf32> -> vector<8x128xf32>
    %209 = arith.addf %206, %208 : vector<8x128xf32>
    %c0_29 = arith.constant 0 : index
    %c0_30 = arith.constant 0 : index
    %210 = vector.load %arg5[%c0_29, %c0_30] : memref<125x128xf32, #tpu.memory_space<vmem>>, vector<125x128xf32>
    %cst_31 = arith.constant dense<0.000000e+00> : vector<8x128xf32>
    %211 = tpu.matmul %198, %210, %cst_31 {dimension_numbers = #tpu.dot_dimension_numbers<[1], [0], [0], [1], [0, 0, 1, 1], [], []>, precision = #tpu.contract_precision<fp32>} : vector<8x125xf32>, vector<125x128xf32>, vector<8x128xf32> -> vector<8x128xf32>
    %212 = arith.addf %209, %211 : vector<8x128xf32>
    %c0_32 = arith.constant 0 : index
    %c0_33 = arith.constant 0 : index
    %213 = vector.load %arg6[%c0_32, %c0_33] : memref<1x128xf32, #tpu.memory_space<vmem>>, vector<1x128xf32>
    %214 = vector.broadcast %213 : vector<1x128xf32> to vector<8x128xf32>
    %215 = arith.addf %212, %214 : vector<8x128xf32>
    %c0_34 = arith.constant 0 : index
    %c0_35 = arith.constant 0 : index
    %216 = vector.load %arg7[%c0_34, %c0_35] : memref<8x128xf32, #tpu.memory_space<vmem>>, vector<8x128xf32>
    tpu.vector_store %arg7[%c0_34, %c0_35], %215 {strides = array<i32>} : memref<8x128xf32, #tpu.memory_space<vmem>>, vector<8x128xf32>,
    return
  }
  func.func @transform_0(%arg0: i32) -> (i32, i32, i32) {
    %c0_i32 = arith.constant 0 : i32
    %c0_i32_0 = arith.constant 0 : i32
    %c0_i32_1 = arith.constant 0 : i32
    return %c0_i32, %arg0, %c0_i32_0 : i32, i32, i32
  }
  func.func @transform_1(%arg0: i32) -> (i32, i32, i32) {
    %c0_i32 = arith.constant 0 : i32
    %c0_i32_0 = arith.constant 0 : i32
    %c0_i32_1 = arith.constant 0 : i32
    %c0_i32_2 = arith.constant 0 : i32
    return %c0_i32, %c0_i32_0, %c0_i32_1 : i32, i32, i32
  }
  func.func @transform_2(%arg0: i32) -> (i32, i32) {
    %c0_i32 = arith.constant 0 : i32
    %c0_i32_0 = arith.constant 0 : i32
    %c0_i32_1 = arith.constant 0 : i32
    return %c0_i32, %c0_i32_0 : i32, i32
  }
  func.func @transform_3(%arg0: i32) -> (i32, i32) {
    %c0_i32 = arith.constant 0 : i32
    %c0_i32_0 = arith.constant 0 : i32
    %c0_i32_1 = arith.constant 0 : i32
    return %c0_i32, %c0_i32_0 : i32, i32
  }
  func.func @transform_4(%arg0: i32) -> (i32, i32) {
    %c0_i32 = arith.constant 0 : i32
    %c0_i32_0 = arith.constant 0 : i32
    %c0_i32_1 = arith.constant 0 : i32
    return %c0_i32, %c0_i32_0 : i32, i32
  }
  func.func @transform_5(%arg0: i32) -> (i32, i32) {
    %c0_i32 = arith.constant 0 : i32
    %c0_i32_0 = arith.constant 0 : i32
    %c0_i32_1 = arith.constant 0 : i32
    return %c0_i32, %c0_i32_0 : i32, i32
  }
  func.func @transform_6(%arg0: i32) -> (i32, i32) {
    %c0_i32 = arith.constant 0 : i32
    %c0_i32_0 = arith.constant 0 : i32
    return %arg0, %c0_i32 : i32, i32
  }
}

</mosaic_0001>

<bundles_post_ra>
// kernel: tpu_custom_call.1
= control target key start
LH: loop header
LB: loop body
LE: loop exit
PB: predicated region body
PF: predicated region fallthrough
CT: control target
= control target key end

     0   :  { %11 = vsyncpa [#allocation3], 0  ;;  %s2074_s0 = inlined_call_operand.vmem [shape: f32[8,8,10], index: 0, kind: input, shape index: {}]   ;;  %s2075_s1 = inlined_call_operand.vmem [shape: f32[3,10,125], index: 1, kind: input, shape index: {}]   ;;  %s2076_s2 = inlined_call_operand.vmem [shape: f32[10,128], index: 2, kind: input, shape index: {}]   ;;  %s2077_s3 = inlined_call_operand.hbm [shape: f32[125,128], index: 3, kind: input, shape index: {}]   ;;  %s2078_s4 = inlined_call_operand.hbm [shape: f32[125,128], index: 4, kind: input, shape index: {}]   ;;  %s2079_s5 = inlined_call_operand.vmem [shape: f32[1,128], index: 5, kind: input, shape index: {}]   ;;  %s2080_s6 = inlined_call_operand.hbm [shape: f32[8,128], index: 6, kind: output, shape index: {}]  }
   0x1   :  { %12 = vsyncpa [#allocation6], 0 }
   0x2   :  { %13 = vsyncpa [#allocation4], 0  ;;  %s24_s23 = sshll.u32 %s2077_s3, 4  ;;  %s1373_s24 = smov [#allocation2]   ;;  %s25_s23 = int_to_ptr.hbm [resolvable:$true] %s24_s23 }
   0x3   :  { %s26_s25 = sshll.u32 %s1373_s24, 4  ;;  %s37_s28 = sshll.u32 %s2078_s4, 4  ;;  %s27_s25 = int_to_ptr.vmem [resolvable:$true] %s26_s25  ;;  %s38_s28 = int_to_ptr.hbm [resolvable:$true] %s37_s28 }
   0x4   :  { %s1374_s29 = smov 128   ;;  %s1375_s30 = smov 8  }
   0x5   :  { %32 = dma.hbm_to_vmem [thread:$0]  %s25_s23, 2048, %s27_s25, [#allocation3], %s1374_s29, %s1374_s29, %s1375_s30  }
   0x6   :  { %s1376_s7 = smov [#allocation5]  }
   0x7   :  { %s39_s8 = sshll.u32 %s1376_s7, 4  ;;  %s40_s8 = int_to_ptr.vmem [resolvable:$true] %s39_s8 }
   0x8   :  { %45 = dma.hbm_to_vmem [thread:$0]  %s38_s28, 2048, %s40_s8, [#allocation6], %s1374_s29, %s1374_s29, %s1375_s30  }
   0x9   :  { %1367 = dma.done.wait [#allocation3], 2048  }
   0xa   :  { %1368 = vsyncadd [#allocation3], 4294965248 }
   0xb   :  { %1369 = dma.done.wait [#allocation6], 2048  }
   0xc   :  { %1370 = vsyncadd [#allocation6], 4294965248  ;;  %vm95_vm0 = vcmask 1041408   ;;  %v65_v0 = vld [vmem:[%s2075_s1 + $0x8] sm:$0x3]  ;;  %v64_v2 = vld [vmem:[%s2075_s1] sm:$0xff] }
   0xd   :  { %v67_v1 = vld [vmem:[%s2075_s1 + $0x18] sm:$0x3]  ;;  %1283 = vmatpush.msk.msra.mxu2 %vm95_vm0, %v65_v0  ;;  %1284 = vmatpush.msk.msra.mxu3 %vm95_vm0, %v65_v0  ;;  %v66_v3 = vld [vmem:[%s2075_s1 + $0x10] sm:$0xff]  ;;  %v60_v4 = vld [vmem:[%s2074_s0 + $0x20] sm:$0xff]  ;;  %vm70_vm1 = vcmask 80896   ;;  %vm358_vm2 = vcmask 1044480  }
   0xe   :  { %1265 = vmatpush.msk.msra.mxu1 %vm95_vm0, %v67_v1  ;;  %v61_v5 = vld [vmem:[%s2074_s0 + $0x28] sm:$0xff]  ;;  %v56_v6 = vld [vmem:[%s2074_s0] sm:$0xff]  ;;  %1256 = vmatpush.msk.msra.mxu0 %vm95_vm0, %v65_v0  ;;  %v58_v9 = vld [vmem:[%s2074_s0 + $0x10] sm:$0xff]  ;;  %vm354_vm3 = vcmask 1022976   ;;  %s1377_s12 = smov [#allocation7]   ;;  %s1245_s16 = sshll.u32 %s2080_s6, 4  ;;  %s1246_s16 = int_to_ptr.hbm [resolvable:$true] %s1245_s16 }
   0xf   :  { %v57_v7 = vld [vmem:[%s2074_s0 + $0x8] sm:$0xff]  ;;  %1285 = vmatpush.msra.mxu2 %v64_v2  ;;  %1286 = vmatpush.msra.mxu3 %v64_v2  ;;  %v59_v12 = vld [vmem:[%s2074_s0 + $0x18] sm:$0xff]  ;;  %v68_v14 = vld [vmem:[%s2075_s1 + $0x20] sm:$0xff]  ;;  %s1243_s13 = sshll.u32 %s1377_s12, 4  ;;  %s1244_s13 = int_to_ptr.vmem [resolvable:$true] %s1243_s13 }
  0x10   :  { %v246_v8 = vadd.f32 %v57_v7, %v56_v6  ;;  %158 = vmatpush.msra.mxu1 %v66_v3  ;;  %1261 = vmatmul.msk.f32.vlgmr.msra.gmra.mxu2 %vm70_vm1, %v60_v4  ;;  %v69_v11 = vld [vmem:[%s2075_s1 + $0x28] sm:$0x3]  ;;  %v1467_v15 = vld [vmem:[%s2074_s0 + $0x38] sm:$0xff]  ;;  %v1473_v17 = vld [vmem:[%s2074_s0 + $0x30] sm:$0xff] }
  0x11   :  { %1262 = vmatmul.msk.f32.vlgmr.msra.gmra.mxu3 %vm70_vm1, %v61_v5  ;;  %1266 = vmatmul.msk.f32.vlgmr.msra.gmra.mxu1 %vm70_vm1, %v56_v6  ;;  %v353_v19 = vld [vmem:[#allocation2 + $0x78] sm:$0x1f]  ;;  %v352_v22 = vld [vmem:[#allocation2 + $0x70] sm:$0xff]  ;;  %v351_v24 = vld [vmem:[#allocation2 + $0x68] sm:$0xff] }
  0x12   :  { %v261_v10 = vadd.f32 %v246_v8, %v58_v9  ;;  %1287 = vmatpush.msk.msrb.mxu2 %vm95_vm0, %v67_v1  ;;  %114 = vmatpush.msra.mxu0 %v64_v2  ;;  %v360_v20 = vsel %vm358_vm2, %v353_v19, 0  ;;  %v1507_v23 = vand.u32 4294901760, %v352_v22  ;;  %v1511_v25 = vand.u32 4294901760, %v351_v24  ;;  %v350_v26 = vld [vmem:[#allocation2 + $0x60] sm:$0xff]  ;;  %v1520_v29 = vld [vmem:[#allocation2 + $0x58] sm:$0xff]  ;;  %v1530_v33 = vld [vmem:[#allocation2 + $0x50] sm:$0xff] }
  0x13   :  { %1257 = vmatmul.msk.f32.vlgmr.msra.gmra.mxu0 %vm70_vm1, %v56_v6  ;;  %v1504_v21 = vand.u32 4294901760, %v360_v20  ;;  %v1515_v27 = vand.u32 4294901760, %v350_v26  ;;  %v1527_v31 = vand.u32 4294901760, %v1520_v29  ;;  %v1534_v34 = vand.u32 4294901760, %v1530_v33  ;;  %v1537_v35 = vld [vmem:[#allocation2 + $0x48] sm:$0xff]  ;;  %v1544_v37 = vld [vmem:[#allocation2 + $0x40] sm:$0xff] }
  0x14   :  { %v276_v13 = vadd.f32 %v261_v10, %v59_v12  ;;  %1288 = vmatpush.msrb.mxu2 %v66_v3  ;;  %v1542_v36 = vand.u32 4294901760, %v1537_v35  ;;  %v1549_v38 = vand.u32 4294901760, %v1544_v37  ;;  %v1553_v40 = vld [vmem:[#allocation2 + $0x38] sm:$0xff]  ;;  %v1560_v42 = vld [vmem:[#allocation2 + $0x30] sm:$0xff]  ;;  %v1569_v45 = vld [vmem:[#allocation2 + $0x28] sm:$0xff]  ;;  %v410_v52 = vsub.f32 %v352_v22, %v1507_v23 }
  0x15   :  { %363 = vmatpush.msrb.mxu3 %v1504_v21  ;;  %559 = vmatpush.msrb.mxu1 %v1504_v21  ;;  %v1523_v30 = vsub.f32 %v360_v20, %v1504_v21  ;;  %v1558_v41 = vand.u32 4294901760, %v1553_v40  ;;  %v1565_v43 = vand.u32 4294901760, %v1560_v42  ;;  %v1574_v46 = vand.u32 4294901760, %v1569_v45  ;;  %v1576_v47 = vld [vmem:[#allocation2 + $0x20] sm:$0xff]  ;;  %v1586_v51 = vld [vmem:[#allocation2 + $0x18] sm:$0xff]  ;;  %v1594_v55 = vld [vmem:[#allocation2 + $0x10] sm:$0xff] }
  0x16   :  { %1274 = vmatpush.msk.msra.mxu2 %vm95_vm0, %v69_v11  ;;  %v291_v16 = vadd.f32 %v276_v13, %v60_v4  ;;  %v1581_v48 = vand.u32 4294901760, %v1576_v47  ;;  %v1592_v53 = vand.u32 4294901760, %v1586_v51  ;;  %v411_v54 = vand.u32 4294901760, %v410_v52  ;;  %v1602_v60 = vld [vmem:[#allocation2 + $0x8] sm:$0xff]  ;;  %v1612_v1 = vld [vmem:[#allocation2] sm:$0xff] }
  0x17   :  { %365 = vmatpush.msrb.mxu3 %v1507_v23  ;;  %561 = vmatpush.msrb.mxu1 %v1507_v23  ;;  %v405_v50 = vand.u32 4294901760, %v1523_v30  ;;  %v416_v56 = vsub.f32 %v351_v24, %v1511_v25  ;;  %v1599_v57 = vand.u32 4294901760, %v1594_v55  ;;  %v422_v61 = vsub.f32 %v350_v26, %v1515_v27 }
  0x18   :  { %202 = vmatpush.msra.mxu2 %v68_v14  ;;  %v1475_v18 = vadd.f32 %v291_v16, %v61_v5  ;;  %506 = vmatpush.msrb.mxu0 %v1523_v30  ;;  %2092 = vst [vmem:[#allocation11_spill] sm:$0xff] %v1581_v48  ;;  %v1607_v62 = vand.u32 4294901760, %v1602_v60  ;;  %v428_v3 = vsub.f32 %v1520_v29, %v1527_v31 }
  0x19   :  { %1273 = vmatmul.msk.f32.vlgmr.msrb.gmra.mxu2 %vm70_vm1, %v1467_v15  ;;  %1263 = vmatmul.msk.f32.gmra.mxu3 %vm70_vm1, %v1473_v17  ;;  %2093 = vst [vmem:[#allocation12_spill] sm:$0xff] %v1592_v53  ;;  %v417_v59 = vand.u32 4294901760, %v416_v56  ;;  %v423_v0 = vand.u32 4294901760, %v422_v61  ;;  %v406_v2 = vsub.f32 %v1523_v30, %v405_v50  ;;  %v434_v10 = vsub.f32 %v1530_v33, %v1534_v34 }
  0x1a   :  { %1267 = vmatmul.msk.f32.gmra.mxu1 %vm70_vm1, %v57_v7  ;;  %367 = vmatpush.msrb.mxu3 %v1511_v25  ;;  %2094 = vst [vmem:[#allocation13_spill] sm:$0xff] %v1599_v57  ;;  %v429_v8 = vand.u32 4294901760, %v428_v3  ;;  %v440_v14 = vsub.f32 %v1537_v35, %v1542_v36  ;;  %v446_v26 = vsub.f32 %v1544_v37, %v1549_v38 }
  0x1b   :  { %1258 = vmatmul.msk.f32.gmra.mxu0 %vm70_vm1, %v57_v7  ;;  %563 = vmatpush.msrb.mxu1 %v1511_v25  ;;  %2095 = vst [vmem:[#allocation14_spill] sm:$0xff] %v1607_v62  ;;  %v418_v13 = vsub.f32 %v416_v56, %v417_v59  ;;  %v424_v24 = vsub.f32 %v422_v61, %v423_v0 }
  0x1c   :  { %369 = vmatpush.msrb.mxu3 %v1515_v27  ;;  %600 = vmatpush.msrb.mxu2 %v405_v50  ;;  %v441_v20 = vand.u32 4294901760, %v440_v14  ;;  %v430_v30 = vsub.f32 %v428_v3, %v429_v8  ;;  %v447_v33 = vand.u32 4294901760, %v446_v26  ;;  %v452_v35 = vsub.f32 %v1553_v40, %v1558_v41 }
  0x1d   :  { %565 = vmatpush.msrb.mxu1 %v1515_v27  ;;  %509 = vmatpush.msrb.mxu0 %v410_v52  ;;  %v419_v19 = vand.u32 4294901760, %v418_v13  ;;  %v458_v37 = vsub.f32 %v1560_v42, %v1565_v43 }
  0x1e   :  { %371 = vmatpush.msrb.mxu3 %v1527_v31  ;;  %604 = vmatpush.msrb.mxu2 %v411_v54  ;;  %v448_v13 = vsub.f32 %v446_v26, %v447_v33 }
  0x1f   :  { %567 = vmatpush.msrb.mxu1 %v1527_v31  ;;  %512 = vmatpush.msrb.mxu0 %v416_v56  ;;  %v431_v56 = vand.u32 4294901760, %v430_v30  ;;  %v459_v40 = vand.u32 4294901760, %v458_v37 }
  0x20   :  { %373 = vmatpush.msrb.mxu3 %v1534_v34  ;;  %608 = vmatpush.msrb.mxu2 %v417_v59 }
  0x21   :  { %1275 = vmatmul.msk.f32.vlgmr.msra.gmra.mxu2 %vm70_vm1, %v56_v6  ;;  %1264 = vmatmul.msk.f32.gmra.mxu3 %vm70_vm1, %v1467_v15 }
  0x22   :  { %1268 = vmatmul.msk.f32.gmra.mxu1 %vm70_vm1, %v58_v9  ;;  %375 = vmatpush.msrb.mxu3 %v1542_v36 }
  0x23   :  { %1259 = vmatmul.msk.f32.gmra.mxu0 %vm70_vm1, %v58_v9  ;;  %569 = vmatpush.msrb.mxu1 %v1534_v34 }
  0x24   :  { %377 = vmatpush.msrb.mxu3 %v1549_v38  ;;  %515 = vmatpush.msrb.mxu0 %v422_v61 }
  0x25   :  { %571 = vmatpush.msrb.mxu1 %v1542_v36  ;;  %612 = vmatpush.msrb.mxu2 %v423_v0 }
  0x26   :  { %379 = vmatpush.msrb.mxu3 %v1558_v41  ;;  %518 = vmatpush.msrb.mxu0 %v428_v3  ;;  %v453_v3 = vand.u32 4294901760, %v452_v35 }
  0x27   :  { %573 = vmatpush.msrb.mxu1 %v1549_v38  ;;  %616 = vmatpush.msrb.mxu2 %v429_v8 }
  0x28   :  { %381 = vmatpush.msrb.mxu3 %v1565_v43  ;;  %521 = vmatpush.msrb.mxu0 %v434_v10 }
  0x29   :  { %1276 = vmatmul.msk.f32.gmra.mxu2 %vm70_vm1, %v57_v7  ;;  %575 = vmatpush.msrb.mxu1 %v1558_v41  ;;  %v407_v7 = vand.u32 4294901760, %v406_v2 }
  0x2a   :  { %1269 = vmatmul.msk.f32.gmra.mxu1 %vm70_vm1, %v59_v12  ;;  %383 = vmatpush.msrb.mxu3 %v1574_v46 }
  0x2b   :  { %1260 = vmatmul.msk.f32.gmra.mxu0 %vm70_vm1, %v59_v12  ;;  %577 = vmatpush.msrb.mxu1 %v1565_v43 }
  0x2c   :  { %385 = vmatpush.msrb.mxu3 %v1581_v48  ;;  %524 = vmatpush.msrb.mxu0 %v440_v14 }
  0x2d   :  { %579 = vmatpush.msrb.mxu1 %v1574_v46 }
  0x2e   :  { %387 = vmatpush.msrb.mxu3 %v1592_v53  ;;  %527 = vmatpush.msrb.mxu0 %v446_v26 }
  0x2f   :  { %581 = vmatpush.msrb.mxu1 %v1581_v48 }
  0x30   :  { %389 = vmatpush.msrb.mxu3 %v1599_v57  ;;  %530 = vmatpush.msrb.mxu0 %v452_v35 }
  0x31   :  { %1277 = vmatmul.msk.f32.gmra.mxu2 %vm70_vm1, %v58_v9  ;;  %583 = vmatpush.msrb.mxu1 %v1592_v53  ;;  %v412_v9 = vsub.f32 %v410_v52, %v411_v54 }
  0x32   :  { %1270 = vmatmul.msk.f32.gmra.mxu1 %vm70_vm1, %v60_v4  ;;  %391 = vmatpush.msrb.mxu3 %v1607_v62 }
  0x33   :  { %585 = vmatpush.msrb.mxu1 %v1599_v57  ;;  %v413_v11 = vand.u32 4294901760, %v412_v9  ;;  %533 = vmatpush.msrb.mxu0 %v458_v37 }
  0x35   :  { %587 = vmatpush.msrb.mxu1 %v1607_v62 }
  0x39   :  { %1278 = vmatmul.msk.f32.gmra.mxu2 %vm70_vm1, %v59_v12  ;;  %v435_v12 = vand.u32 4294901760, %v434_v10 }
  0x3a   :  { %1271 = vmatmul.msk.f32.gmra.mxu1 %vm70_vm1, %v61_v5 }
  0x3b   :  { %620 = vmatpush.msrb.mxu2 %v435_v12  ;;  %v436_v59 = vsub.f32 %v434_v10, %v435_v12 }
  0x3d   :  { %624 = vmatpush.msrb.mxu2 %v441_v20 }
  0x3f   :  { %628 = vmatpush.msrb.mxu2 %v447_v33 }
  0x41   :  { %1279 = vmatmul.msk.f32.gmra.mxu2 %vm70_vm1, %v60_v4 }
  0x42   :  { %1272 = vmatmul.msk.f32.gmra.mxu1 %vm70_vm1, %v1473_v17  ;;  %632 = vmatpush.msrb.mxu2 %v453_v3 }
  0x44   :  { %636 = vmatpush.msrb.mxu2 %v459_v40 }
  0x49   :  { %1280 = vmatmul.msk.f32.gmra.mxu2 %vm70_vm1, %v61_v5  ;;  %v1620_v5 = vand.u32 4294901760, %v1612_v1 }
  0x4b   :  { %2096 = vst [vmem:[#allocation15_spill] sm:$0xff] %v1620_v5  ;;  %393 = vmatpush.msrb.mxu3 %v1620_v5  ;;  %589 = vmatpush.msrb.mxu1 %v1620_v5 }
  0x4d   :  { %408 = vmatpush.msra.mxu3 %v407_v7  ;;  %v464_v7 = vsub.f32 %v1569_v45, %v1574_v46 }
  0x4f   :  { %414 = vmatpush.msra.mxu3 %v413_v11  ;;  %536 = vmatpush.msrb.mxu0 %v464_v7 }
  0x51   :  { %1281 = vmatmul.msk.f32.gmra.mxu2 %vm70_vm1, %v1473_v17  ;;  %420 = vmatpush.msra.mxu3 %v419_v19 }
  0x59   :  { %1282 = vmatmul.msk.f32.gmra.mxu2 %vm70_vm1, %v1467_v15 }
  0x8e   :  { %v160_v32 = vpop.f32.mrf.mxu1 }
  0x90   :  { %v116_v58 = vpop.f32.mrf.mxu0 }
  0x93   :  { %v1518_v28 = vpop.f32.mrf.mxu2 }
  0x97   :  { %v1567_v44 = vpop.f32.mrf.mxu1 }
  0x98   :  { %v232_v22 = vmul.f32 0.5, %v1567_v44  ;;  %v119_v29 = vpop.f32.mrf.mxu0 }
  0x9a   :  { %v233_v61 = vmul.f32 %v232_v22, %v119_v29 }
  0x9c   :  { %v1551_v39 = vpop.f32.mrf.mxu2 }
  0x9f   :  { %v1610_v63 = vpop.f32.mrf.mxu1 }
  0xa0   :  { %v247_v45 = vmul.f32 0.5, %v1610_v63 }
  0xa4   :  { %v1583_v49 = vpop.f32.mrf.mxu2 }
  0xa5   :  { %v228_v4 = vmul.f32 %v1583_v49, %v160_v32  ;;  %v425_v32 = vand.u32 4294901760, %v424_v24  ;;  %v242_v0 = vmul.f32 %v1583_v49, %v1567_v44  ;;  %v465_v44 = vand.u32 4294901760, %v464_v7 }
  0xa6   :  { %v237_v11 = vmul.f32 %v233_v61, %v1583_v49  ;;  %v449_v24 = vand.u32 4294901760, %v448_v13 }
  0xa7   :  { %v229_v16 = vmul.f32 0.5, %v228_v4  ;;  %v1635_v52 = vpop.f32.mrf.mxu1  ;;  %426 = vmatpush.msra.mxu3 %v425_v32  ;;  %v437_v4 = vand.u32 4294901760, %v436_v59  ;;  %v122_v32 = vpop.f32.mrf.mxu0  ;;  %640 = vmatpush.msrb.mxu2 %v465_v44 }
  0xa9   :  { %v230_v50 = vmul.f32 %v229_v16, %v116_v58  ;;  %v442_v58 = vsub.f32 %v440_v14, %v441_v20  ;;  %432 = vmatpush.msra.mxu3 %v431_v56  ;;  %v243_v9 = vadd.f32 %v242_v0, %v229_v16  ;;  %v470_v14 = vsub.f32 %v1576_v47, %v1581_v48 }
  0xaa   :  { %v235_v19 = vmul.f32 %v229_v16, %v119_v29  ;;  %v454_v20 = vsub.f32 %v452_v35, %v453_v3  ;;  %v460_v16 = vsub.f32 %v458_v37, %v459_v40  ;;  %v466_v0 = vsub.f32 %v464_v7, %v465_v44 }
  0xab   :  { %v231_v42 = vmul.f32 0.33333334, %v230_v50  ;;  %v443_v10 = vand.u32 4294901760, %v442_v58  ;;  %438 = vmatpush.msra.mxu3 %v437_v4  ;;  %v471_v30 = vand.u32 4294901760, %v470_v14  ;;  %539 = vmatpush.msrb.mxu0 %v470_v14  ;;  %v248_v37 = vmul.f32 %v247_v45, %v122_v32 }
  0xac   :  { %v207_v6 = vpop.f32.mrf.mxu2  ;;  %v455_v47 = vand.u32 4294901760, %v454_v20  ;;  %v1665_v4 = vmul.f32 0.5, %v1635_v52  ;;  %v467_v40 = vand.u32 4294901760, %v466_v0 }
  0xad   :  { %v234_v2 = vmul.f32 %v232_v22, %v207_v6  ;;  %v1644_v8 = vadd.f32 %v207_v6, %v1583_v49  ;;  %444 = vmatpush.msra.mxu3 %v443_v10  ;;  %v476_v49 = vsub.f32 %v1586_v51, %v1592_v53  ;;  %v236_v26 = vadd.f32 %v235_v19, %v231_v42  ;;  %v336_v10 = vld [vmem:[%s2076_s2] sm:$0xff] }
  0xae   :  { %644 = vmatpush.msrb.mxu2 %v471_v30  ;;  %v461_v51 = vand.u32 4294901760, %v460_v16 }
  0xaf   :  { %v239_v12 = vmul.f32 %v234_v2, %v119_v29  ;;  %v244_v6 = vadd.f32 %v243_v9, %v234_v2  ;;  %v257_v22 = vmul.f32 %v1644_v8, %v1610_v63  ;;  %v482_v29 = vsub.f32 %v1594_v55, %v1599_v57  ;;  %450 = vmatpush.msra.mxu3 %v449_v24  ;;  %v172_v59 = vpop.f32.mrf.mxu1  ;;  %v337_v55 = vld [vmem:[%s2076_s2 + $0x8] sm:$0x3] }
  0xb0   :  { %v477_v56 = vand.u32 4294901760, %v476_v49  ;;  %542 = vmatpush.msrb.mxu0 %v476_v49  ;;  %v488_v2 = vsub.f32 %v1602_v60, %v1607_v62  ;;  %v472_v9 = vsub.f32 %v470_v14, %v471_v30  ;;  %v707_v13 = vsel %vm95_vm0, %v337_v55, 0 }
  0xb1   :  { %v240_v35 = vmul.f32 0.33333334, %v239_v12  ;;  %v483_v61 = vand.u32 4294901760, %v482_v29  ;;  %v258_v3 = vadd.f32 %v257_v22, %v244_v6  ;;  %456 = vmatpush.msra.mxu3 %v455_v47  ;;  %v250_v42 = vmul.f32 %v244_v6, %v122_v32 }
  0xb2   :  { %648 = vmatpush.msrb.mxu2 %v477_v56  ;;  %545 = vmatpush.msrb.mxu0 %v482_v29  ;;  %v489_v58 = vand.u32 4294901760, %v488_v2  ;;  %v494_v12 = vsub.f32 %v1612_v1, %v1620_v5  ;;  %v478_v14 = vsub.f32 %v476_v49, %v477_v56  ;;  %v1681_v19 = vand.u32 4294901760, %v707_v13 }
  0xb3   :  { %462 = vmatpush.msra.mxu3 %v461_v51  ;;  %v484_v24 = vsub.f32 %v482_v29, %v483_v61  ;;  %v1683_v30 = vand.u32 4294901760, %v336_v10  ;;  %v252_v56 = vmul.f32 %v248_v37, %v1644_v8  ;;  %v125_v37 = vpop.f32.mrf.mxu0 }
  0xb4   :  { %v210_v54 = vpop.f32.mrf.mxu2  ;;  %652 = vmatpush.msrb.mxu2 %v483_v61  ;;  %548 = vmatpush.msrb.mxu0 %v488_v2  ;;  %v495_v22 = vand.u32 4294901760, %v494_v12  ;;  %v1688_v49 = vsub.f32 %v707_v13, %v1681_v19 }
  0xb5   :  { %v249_v50 = vmul.f32 %v247_v45, %v210_v54  ;;  %v1657_v63 = vadd.f32 %v1644_v8, %v210_v54  ;;  %v238_v54 = vadd.f32 %v237_v11, %v236_v26  ;;  %468 = vmatpush.msra.mxu3 %v467_v40  ;;  %v479_v26 = vand.u32 4294901760, %v478_v14 }
  0xb6   :  { %656 = vmatpush.msrb.mxu2 %v489_v58  ;;  %551 = vmatpush.msrb.mxu0 %v494_v12  ;;  %v1691_v16 = vsub.f32 %v336_v10, %v1683_v30  ;;  %v752_v61 = vand.u32 4294901760, %v1688_v49  ;;  %v496_v8 = vsub.f32 %v494_v12, %v495_v22 }
  0xb7   :  { %v1667_v7 = vadd.f32 %v258_v3, %v249_v50  ;;  %v272_v60 = vmul.f32 %v1657_v63, %v1635_v52  ;;  %v241_v44 = vadd.f32 %v240_v35, %v238_v54  ;;  %v473_v52 = vand.u32 4294901760, %v472_v9  ;;  %v175_v47 = vpop.f32.mrf.mxu1 }
  0xb8   :  { %v254_v6 = vmul.f32 %v249_v50, %v122_v32  ;;  %724 = vmatpush.msra.mxu0 %v1681_v19  ;;  %660 = vmatpush.msrb.mxu2 %v495_v22  ;;  %v485_v32 = vand.u32 4294901760, %v484_v24  ;;  %v1693_v35 = vmul.f32 0.5, %v172_v59  ;;  %v758_v0 = vand.u32 4294901760, %v1691_v16 }
  0xb9   :  { %v273_v1 = vadd.f32 %v272_v60, %v1667_v7  ;;  %474 = vmatpush.msra.mxu3 %v473_v52  ;;  %v490_v54 = vsub.f32 %v488_v2, %v489_v58  ;;  %835 = vmatpush.msra.mxu1 %v752_v61  ;;  %v497_v10 = vand.u32 4294901760, %v496_v8  ;;  %v883_v58 = vld [vmem:[#allocation5 + $0x78] sm:$0x1f]  ;;  %v263_v52 = vmul.f32 %v1665_v4, %v125_v37 }
  0xba   :  { %v255_v51 = vmul.f32 0.33333334, %v254_v6  ;;  %783 = vmatpush.msra.mxu2 %v1688_v49  ;;  %726 = vmatpush.msra.mxu0 %v1683_v30  ;;  %v265_v12 = vmul.f32 %v1667_v7, %v125_v37  ;;  %v321_v22 = vadd.f32 %v1475_v18, %v1473_v17 }
  0xbb   :  { %480 = vmatpush.msra.mxu3 %v479_v26  ;;  %839 = vmatpush.msra.mxu1 %v758_v0  ;;  %v888_v26 = vsel %vm358_vm2, %v883_v58, 0 }
  0xbc   :  { %v213_v33 = vpop.f32.mrf.mxu2  ;;  %786 = vmatpush.msra.mxu2 %v1691_v16  ;;  %v1735_v17 = vand.u32 4294901760, %v888_v26 }
  0xbd   :  { %v264_v11 = vmul.f32 %v1665_v4, %v213_v33  ;;  %v1679_v45 = vadd.f32 %v1657_v63, %v213_v33  ;;  %v251_v33 = vadd.f32 %v250_v42, %v241_v44  ;;  %486 = vmatpush.msra.mxu3 %v485_v32  ;;  %v491_v42 = vand.u32 4294901760, %v490_v54 }
  0xbe   :  { %v1710_v44 = vmul.f32 0.5, %v175_v47  ;;  %v267_v4 = vmul.f32 %v263_v52, %v1657_v63 }
  0xbf   :  { %v274_v29 = vadd.f32 %v273_v1, %v264_v11  ;;  %v287_v50 = vmul.f32 %v1679_v45, %v172_v59  ;;  %v253_v59 = vadd.f32 %v252_v56, %v251_v33  ;;  %492 = vmatpush.msra.mxu3 %v491_v42  ;;  %v269_v14 = vmul.f32 %v264_v11, %v125_v37  ;;  %v178_v1 = vpop.f32.mrf.mxu1 }
  0xc0   :  { %v1728_v11 = vmul.f32 0.5, %v178_v1  ;;  %v335_v56 = vadd.f32 %v321_v22, %v1467_v15  ;;  %v1748_v15 = vsub.f32 %v888_v26, %v1735_v17 }
  0xc1   :  { %v288_v40 = vadd.f32 %v287_v50, %v274_v29  ;;  %v256_v60 = vadd.f32 %v255_v51, %v253_v59  ;;  %498 = vmatpush.msra.mxu3 %v497_v10  ;;  %v270_v7 = vmul.f32 0.33333334, %v269_v14  ;;  %v882_v50 = vld [vmem:[#allocation5 + $0x70] sm:$0xff]  ;;  %v881_v59 = vld [vmem:[#allocation5 + $0x68] sm:$0xff] }
  0xc2   :  { %v1743_v37 = vand.u32 4294901760, %v882_v50  ;;  %v704_v42 = vsel %vm70_vm1, %v335_v56, 0  ;;  %v1752_v10 = vand.u32 4294901760, %v881_v59 }
  0xc3   :  { %v266_v24 = vadd.f32 %v265_v12, %v256_v60  ;;  %v280_v60 = vmul.f32 %v274_v29, %v1518_v28  ;;  %v278_v12 = vmul.f32 %v1693_v35, %v1518_v28  ;;  %v879_v29 = vld [vmem:[#allocation5 + $0x58] sm:$0xff] }
  0xc4   :  { %v216_v20 = vpop.f32.mrf.mxu2  ;;  %v1762_v22 = vsub.f32 %v882_v50, %v1743_v37  ;;  %v1780_v56 = vand.u32 4294901760, %v879_v29 }
  0xc5   :  { %v279_v3 = vmul.f32 %v1693_v35, %v216_v20  ;;  %v1703_v55 = vadd.f32 %v1679_v45, %v216_v20  ;;  %v268_v18 = vadd.f32 %v267_v4, %v266_v24  ;;  %v1764_v24 = vand.u32 4294901760, %v704_v42  ;;  %v878_v35 = vld [vmem:[#allocation5 + $0x50] sm:$0xff] }
  0xc6   :  { %v282_v26 = vmul.f32 %v278_v12, %v1679_v45 }
  0xc7   :  { %v1712_v13 = vadd.f32 %v288_v40, %v279_v3  ;;  %v302_v2 = vmul.f32 %v1703_v55, %v175_v47  ;;  %v271_v8 = vadd.f32 %v270_v7, %v268_v18  ;;  %v2081_v7 = vand.u32 4294901760, %v1748_v15 }
  0xc8   :  { %v2082_v18 = vand.u32 4294901760, %v1762_v22  ;;  %v1784_v45 = vsub.f32 %v704_v42, %v1764_v24 }
  0xc9   :  { %v303_v33 = vadd.f32 %v302_v2, %v1712_v13  ;;  %v880_v2 = vld [vmem:[#allocation5 + $0x60] sm:$0xff]  ;;  %v281_v14 = vadd.f32 %v280_v60, %v271_v8  ;;  %v131_v8 = vpop.f32.mrf.mxu3  ;;  %v753_v60 = vsub.f32 %v1688_v49, %v752_v61  ;;  %v934_v42 = vsub.f32 %v1748_v15, %v2081_v7 }
  0xca   :  { %v759_v49 = vsub.f32 %v1691_v16, %v758_v0  ;;  %v875_v0 = vld [vmem:[#allocation5 + $0x38] sm:$0xff] }
  0xcb   :  { %v754_v7 = vand.u32 4294901760, %v753_v60  ;;  %v1837_v62 = vand.u32 4294901760, %v875_v0 }
  0xcc   :  { %v219_v9 = vpop.f32.mrf.mxu2 }
  0xcd   :  { %v1718_v6 = vmul.f32 %v1710_v44, %v219_v9  ;;  %v1721_v20 = vadd.f32 %v1703_v55, %v219_v9  ;;  %v284_v9 = vmul.f32 %v279_v3, %v1518_v28  ;;  %v1767_v3 = vmul.f32 0.5, %v1551_v39 }
  0xce   :  { %v1774_v28 = vsub.f32 %v881_v59, %v1752_v10 }
  0xcf   :  { %v1731_v47 = vadd.f32 %v303_v33, %v1718_v6  ;;  %v317_v32 = vmul.f32 %v1721_v20, %v178_v1  ;;  %v1769_v1 = vand.u32 4294901760, %v880_v2  ;;  %v285_v33 = vmul.f32 0.33333334, %v284_v9 }
  0xd0   :  { %v1793_v9 = vand.u32 4294901760, %v878_v35 }
  0xd1   :  { %v318_v40 = vadd.f32 %v317_v32, %v1731_v47 }
  0xd2   :  { %2097 = vst [vmem:[#allocation16_spill] sm:$0xff] %v1793_v9  ;;  %v1819_v16 = vsub.f32 %v878_v35, %v1793_v9 }
  0xd4   :  { %v222_v51 = vpop.f32.mrf.mxu2 }
  0xd5   :  { %v1738_v54 = vmul.f32 %v1728_v11, %v222_v51  ;;  %v1741_v63 = vadd.f32 %v1721_v20, %v222_v51  ;;  %v877_v51 = vld [vmem:[#allocation5 + $0x48] sm:$0xff] }
  0xd6   :  { %v1807_v61 = vand.u32 4294901760, %v877_v51 }
  0xd7   :  { %v1755_v58 = vadd.f32 %v318_v40, %v1738_v54  ;;  %v332_v52 = vmul.f32 %v1741_v63, %v1551_v39  ;;  %v283_v39 = vadd.f32 %v282_v26, %v281_v14  ;;  %v1788_v40 = vsub.f32 %v880_v2, %v1769_v1 }
  0xd8   :  { %v1802_v2 = vsub.f32 %v879_v29, %v1780_v56  ;;  %2098 = vst [vmem:[#allocation17_spill] sm:$0xff] %v1807_v61  ;;  %v940_v29 = vsub.f32 %v1762_v22, %v2082_v18  ;;  %v1831_v35 = vsub.f32 %v877_v51, %v1807_v61 }
  0xd9   :  { %v333_v50 = vadd.f32 %v332_v52, %v1755_v58  ;;  %v293_v52 = vmul.f32 %v1710_v44, %v131_v8  ;;  %v286_v12 = vadd.f32 %v285_v33, %v283_v39  ;;  %v295_v44 = vmul.f32 %v1712_v13, %v131_v8 }
  0xda   :  { %v299_v33 = vmul.f32 %v1718_v6, %v131_v8  ;;  %v935_v6 = vand.u32 4294901760, %v934_v42  ;;  %v2099_v39 = vand.u32 4294901760, %v1774_v28  ;;  %v2100_v42 = vand.u32 4294901760, %v1784_v45 }
  0xdb   :  { %v296_v14 = vadd.f32 %v295_v44, %v286_v12  ;;  %v874_v12 = vld [vmem:[#allocation5 + $0x30] sm:$0xff]  ;;  %v297_v44 = vmul.f32 %v293_v52, %v1703_v55  ;;  %v941_v53 = vand.u32 4294901760, %v940_v29  ;;  %v873_v55 = vld [vmem:[#allocation5 + $0x28] sm:$0xff]  ;;  %v2102_v29 = vand.u32 4294901760, %v1802_v2 }
  0xdc   :  { %v225_v4 = vpop.f32.mrf.mxu2  ;;  %v946_v18 = vsub.f32 %v1774_v28, %v2099_v39  ;;  %v730_v5 = vsub.f32 %v1784_v45, %v2100_v42  ;;  %v300_v57 = vmul.f32 0.33333334, %v299_v33  ;;  %v1847_v42 = vand.u32 4294901760, %v874_v12 }
  0xdd   :  { %v1777_v32 = vmul.f32 %v1767_v3, %v225_v4  ;;  %v876_v4 = vld [vmem:[#allocation5 + $0x40] sm:$0xff]  ;;  %v298_v61 = vadd.f32 %v297_v44, %v296_v14  ;;  %v958_v48 = vsub.f32 %v1802_v2, %v2102_v29  ;;  %v871_v44 = vld [vmem:[#allocation5 + $0x18] sm:$0xff]  ;;  %v134_v29 = vpop.f32.mrf.mxu3 }
  0xde   :  { %v1823_v8 = vand.u32 4294901760, %v876_v4  ;;  %v947_v33 = vand.u32 4294901760, %v946_v18  ;;  %v731_v9 = vand.u32 4294901760, %v730_v5  ;;  %v2103_v18 = vand.u32 4294901760, %v1819_v16 }
  0xdf   :  { %v334_v59 = vadd.f32 %v333_v50, %v1777_v32  ;;  %v1864_v5 = vsub.f32 %v874_v12, %v1847_v42 }
  0xe0   :  { %v1845_v60 = vsub.f32 %v876_v4, %v1823_v8  ;;  %v1856_v4 = vand.u32 4294901760, %v873_v55 }
  0xe1   :  { %v356_v26 = vsel %vm354_vm3, %v334_v59, 0  ;;  %v760_v59 = vand.u32 4294901760, %v759_v49  ;;  %v2101_v49 = vand.u32 4294901760, %v1788_v40 }
  0xe2   :  { %v1811_v50 = vand.u32 4294901760, %v356_v26 }
  0xe3   :  { %v952_v51 = vsub.f32 %v1788_v40, %v2101_v49  ;;  %v872_v49 = vld [vmem:[#allocation5 + $0x20] sm:$0xff] }
  0xe4   :  { %662 = vmatmul.f32.vlgmr.msrb.gmra.mxu2 %v1811_v50  ;;  %v395_v13 = vsub.f32 %v356_v26, %v1811_v50 }
  0xe5   :  { %860 = vmatpush.msrb.mxu2 %v1681_v19  ;;  %v953_v14 = vand.u32 4294901760, %v952_v51 }
  0xe6   :  { %554 = vmatmul.f32.vlgmr.msrb.gmra.mxu0 %v395_v13  ;;  %v396_v26 = vand.u32 4294901760, %v395_v13 }
  0xe7   :  { %862 = vmatpush.msrb.mxu2 %v1683_v30  ;;  %755 = vmatpush.msrb.mxu0 %v754_v7  ;;  %v969_v7 = vand.u32 4294901760, %v1831_v35 }
  0xe8   :  { %593 = vmatmul.f32.vlgmr.msrb.gmra.mxu1 %v396_v26  ;;  %v397_v52 = vsub.f32 %v395_v13, %v396_v26  ;;  %v1854_v13 = vsub.f32 %v875_v0, %v1837_v62  ;;  %v301_v26 = vadd.f32 %v300_v57, %v298_v61  ;;  %v1866_v0 = vand.u32 4294901760, %v872_v49 }
  0xe9   :  { %936 = vmatpush.msrb.mxu1 %v935_v6  ;;  %761 = vmatpush.msrb.mxu0 %v760_v59  ;;  %v964_v6 = vsub.f32 %v1819_v16, %v2103_v18  ;;  %v975_v59 = vand.u32 4294901760, %v1845_v60  ;;  %v308_v57 = vmul.f32 %v1728_v11, %v134_v29  ;;  %v959_v61 = vand.u32 4294901760, %v958_v48 }
  0xea   :  { %v398_v39 = vand.u32 4294901760, %v397_v52  ;;  %v970_v51 = vsub.f32 %v1831_v35, %v969_v7  ;;  %v314_v52 = vmul.f32 %v1738_v54, %v134_v29  ;;  %v981_v12 = vand.u32 4294901760, %v1854_v13 }
  0xeb   :  { %942 = vmatpush.msrb.mxu1 %v941_v53  ;;  %v310_v53 = vmul.f32 %v1731_v47, %v134_v29  ;;  %v1878_v11 = vsub.f32 %v873_v55, %v1856_v4  ;;  %v1880_v47 = vand.u32 4294901760, %v871_v44  ;;  %v965_v48 = vand.u32 4294901760, %v964_v6  ;;  %v868_v29 = vld [vmem:[#allocation5] sm:$0xff] }
  0xec   :  { %399 = vmatmul.f32.vlgmr.msrb.gmra.mxu3 %v398_v39  ;;  %789 = vmatmul.f32.vlgmr.msra.gmra.mxu2 %v1784_v45  ;;  %v870_v39 = vld [vmem:[#allocation5 + $0x10] sm:$0xff]  ;;  %v976_v54 = vsub.f32 %v1845_v60, %v975_v59  ;;  %v1890_v55 = vsub.f32 %v872_v49, %v1866_v0  ;;  %v315_v18 = vmul.f32 0.33333334, %v314_v52 }
  0xed   :  { %667 = vmatpush.msrb.mxu3 %v1504_v21  ;;  %948 = vmatpush.msrb.mxu1 %v947_v33  ;;  %v311_v21 = vadd.f32 %v310_v53, %v301_v26  ;;  %v1892_v33 = vand.u32 4294901760, %v870_v39  ;;  %v869_v26 = vld [vmem:[#allocation5 + $0x8] sm:$0xff]  ;;  %v993_v49 = vand.u32 4294901760, %v1878_v11  ;;  %v1903_v6 = vsub.f32 %v871_v44, %v1880_v47 }
  0xee   :  { %1034 = vmatpush.msra.mxu2 %v1748_v15  ;;  %732 = vmatmul.f32.vlgmr.msra.gmra.mxu0 %v731_v9  ;;  %v987_v9 = vand.u32 4294901760, %v1864_v5  ;;  %v999_v53 = vand.u32 4294901760, %v1890_v55 }
  0xef   :  { %669 = vmatpush.msrb.mxu3 %v1507_v23  ;;  %954 = vmatpush.msrb.mxu1 %v953_v14  ;;  %v312_v23 = vmul.f32 %v308_v57, %v1721_v20  ;;  %v971_v14 = vand.u32 4294901760, %v970_v51  ;;  %v1915_v44 = vsub.f32 %v870_v39, %v1892_v33 }
  0xf0   :  { %1037 = vmatpush.msra.mxu2 %v1762_v22  ;;  %808 = vmatpush.msra.mxu0 %v1681_v19  ;;  %v982_v19 = vsub.f32 %v1854_v13, %v981_v12  ;;  %v988_v57 = vsub.f32 %v1864_v5, %v987_v9 }
  0xf1   :  { %671 = vmatpush.msrb.mxu3 %v1511_v25  ;;  %960 = vmatpush.msrb.mxu1 %v959_v61  ;;  %v313_v20 = vadd.f32 %v312_v23, %v311_v21  ;;  %v1906_v25 = vand.u32 4294901760, %v869_v26  ;;  %v137_v61 = vpop.f32.mrf.mxu3  ;;  %v994_v21 = vsub.f32 %v1878_v11, %v993_v49 }
  0xf2   :  { %1040 = vmatpush.msra.mxu2 %v1774_v28  ;;  %810 = vmatpush.msra.mxu0 %v1683_v30  ;;  %v977_v30 = vand.u32 4294901760, %v976_v54  ;;  %v983_v52 = vand.u32 4294901760, %v982_v19  ;;  %v325_v39 = vmul.f32 %v1755_v58, %v137_v61  ;;  %v329_v54 = vmul.f32 %v1777_v32, %v137_v61 }
  0xf3   :  { %673 = vmatpush.msrb.mxu3 %v1515_v27  ;;  %966 = vmatpush.msrb.mxu1 %v965_v48  ;;  %v1918_v27 = vand.u32 4294901760, %v868_v29  ;;  %v316_v51 = vadd.f32 %v315_v18, %v313_v20  ;;  %v1005_v48 = vand.u32 4294901760, %v1903_v6  ;;  %v989_v23 = vand.u32 4294901760, %v988_v57 }
  0xf4   :  { %1043 = vmatpush.msra.mxu2 %v1788_v40  ;;  %500 = vmatmul.f32.vlgmr.msra.gmra.mxu3 %v1811_v50  ;;  %v1011_v18 = vand.u32 4294901760, %v1915_v44  ;;  %v323_v58 = vmul.f32 %v1767_v3, %v137_v61  ;;  %v330_v20 = vmul.f32 0.33333334, %v329_v54 }
  0xf5   :  { %675 = vmatpush.msrb.mxu3 %v1527_v31  ;;  %972 = vmatpush.msrb.mxu1 %v971_v14  ;;  %v1930_v31 = vsub.f32 %v869_v26, %v1906_v25  ;;  %v1000_v14 = vsub.f32 %v1890_v55, %v999_v53  ;;  %v326_v32 = vadd.f32 %v325_v39, %v316_v51  ;;  %v995_v26 = vand.u32 4294901760, %v994_v21  ;;  %v2105_v21 = vld [vmem:[#allocation11_spill] sm:$0xff] }
  0xf6   :  { %1046 = vmatpush.msra.mxu2 %v1802_v2  ;;  %763 = vmatmul.f32.vlgmr.msrb.gmra.mxu0 %v1764_v24  ;;  %v1006_v19 = vsub.f32 %v1903_v6, %v1005_v48 }
  0xf7   :  { %677 = vmatpush.msrb.mxu3 %v1534_v34  ;;  %891 = vmatpush.msrb.mxu0 %v1735_v17  ;;  %v1941_v34 = vsub.f32 %v868_v29, %v1918_v27  ;;  %v327_v29 = vmul.f32 %v323_v58, %v1741_v63  ;;  %v1001_v3 = vand.u32 4294901760, %v1000_v14 }
  0xf8   :  { %978 = vmatpush.msrb.mxu1 %v977_v30  ;;  %1049 = vmatpush.msra.mxu2 %v1819_v16  ;;  %v1012_v30 = vsub.f32 %v1915_v44, %v1011_v18  ;;  %v1007_v63 = vand.u32 4294901760, %v1006_v19  ;;  %v2110_v19 = vld [vmem:[#allocation15_spill] sm:$0xff] }
  0xf9   :  { %679 = vmatpush.msrb.mxu3 %v1542_v36  ;;  %893 = vmatpush.msrb.mxu0 %v1743_v37  ;;  %v1017_v36 = vand.u32 4294901760, %v1930_v31  ;;  %v328_v57 = vadd.f32 %v327_v29, %v326_v32  ;;  %v2108_v32 = vld [vmem:[#allocation13_spill] sm:$0xff] }
  0xfa   :  { %984 = vmatpush.msrb.mxu1 %v983_v52  ;;  %1052 = vmatpush.msra.mxu2 %v1831_v35 }
  0xfb   :  { %681 = vmatpush.msrb.mxu3 %v1549_v38  ;;  %895 = vmatpush.msrb.mxu0 %v1752_v10  ;;  %v1023_v38 = vand.u32 4294901760, %v1941_v34  ;;  %v1018_v61 = vsub.f32 %v1930_v31, %v1017_v36  ;;  %v331_v51 = vadd.f32 %v330_v20, %v328_v57  ;;  %v2111_v20 = vand.u32 4294901760, %v1784_v45 }
  0xfc   :  { %990 = vmatpush.msrb.mxu1 %v989_v23  ;;  %1055 = vmatpush.msra.mxu2 %v1845_v60  ;;  %v2106_v23 = vld [vmem:[#allocation17_spill] sm:$0xff] }
  0xfd   :  { %683 = vmatpush.msrb.mxu3 %v1558_v41  ;;  %897 = vmatpush.msrb.mxu0 %v1769_v1  ;;  %v1013_v41 = vand.u32 4294901760, %v1012_v30  ;;  %v1024_v52 = vsub.f32 %v1941_v34, %v1023_v38  ;;  %v1019_v39 = vand.u32 4294901760, %v1018_v61  ;;  %v885_v54 = vsel %vm354_vm3, %v331_v51, 0  ;;  %v1294_v30 = vld [vmem:[%s2079_s5] ss:$0 sm:$0xff] }
  0xfe   :  { %996 = vmatpush.msrb.mxu1 %v995_v26  ;;  %1058 = vmatpush.msra.mxu2 %v1854_v13  ;;  %v1981_v58 = vand.u32 4294901760, %v885_v54  ;;  %v2109_v26 = vld [vmem:[#allocation14_spill] sm:$0xff] }
  0xff   :  { %685 = vmatpush.msrb.mxu3 %v1565_v43  ;;  %899 = vmatpush.msrb.mxu0 %v1780_v56  ;;  %v2104_v43 = vld [vmem:[#allocation16_spill] sm:$0xff]  ;;  %v1025_v14 = vand.u32 4294901760, %v1024_v52 }
 0x100   :  { %1002 = vmatpush.msrb.mxu1 %v1001_v3  ;;  %1061 = vmatpush.msra.mxu2 %v1864_v5 }
 0x101   :  { %841 = vmatmul.f32.vlgmr.msra.gmra.mxu1 %v1764_v24  ;;  %687 = vmatpush.msrb.mxu3 %v1574_v46  ;;  %v2107_v46 = vld [vmem:[#allocation12_spill] sm:$0xff] }
 0x102   :  { %901 = vmatpush.msrb.mxu0 %v2104_v43  ;;  %1008 = vmatpush.msrb.mxu1 %v1007_v63 }
 0x103   :  { %1064 = vmatpush.msra.mxu2 %v1878_v11  ;;  %689 = vmatpush.msrb.mxu3 %v2105_v21 }
 0x104   :  { %903 = vmatpush.msrb.mxu0 %v2106_v23  ;;  %1014 = vmatpush.msrb.mxu1 %v1013_v41 }
 0x105   :  { %1067 = vmatpush.msra.mxu2 %v1890_v55  ;;  %691 = vmatpush.msrb.mxu3 %v2107_v46 }
 0x106   :  { %864 = vmatmul.f32.vlgmr.msrb.gmra.mxu2 %v1764_v24  ;;  %905 = vmatpush.msrb.mxu0 %v1823_v8  ;;  %v923_v24 = vsub.f32 %v885_v54, %v1981_v58 }
 0x107   :  { %1020 = vmatpush.msrb.mxu1 %v1019_v39  ;;  %1070 = vmatpush.msra.mxu2 %v1903_v6 }
 0x108   :  { %693 = vmatpush.msrb.mxu3 %v2108_v32  ;;  %907 = vmatpush.msrb.mxu0 %v1837_v62  ;;  %v924_v29 = vand.u32 4294901760, %v923_v24 }
 0x109   :  { %1026 = vmatpush.msrb.mxu1 %v1025_v14  ;;  %1073 = vmatpush.msra.mxu2 %v1915_v44 }
 0x10a   :  { %1028 = vmatmul.f32.vlgmr.msrb.gmra.mxu1 %v1981_v58  ;;  %695 = vmatpush.msrb.mxu3 %v2109_v26 }
 0x10b   :  { %1195 = vmatpush.msra.mxu1 %v1735_v17  ;;  %909 = vmatpush.msrb.mxu0 %v1847_v42 }
 0x10c   :  { %1076 = vmatpush.msra.mxu2 %v1930_v31  ;;  %697 = vmatpush.msrb.mxu3 %v2110_v19 }
 0x10d   :  { %1197 = vmatpush.msra.mxu1 %v1743_v37  ;;  %911 = vmatpush.msrb.mxu0 %v1856_v4 }
 0x10e   :  { %1079 = vmatpush.msra.mxu2 %v1941_v34  ;;  %699 = vmatmul.f32.vlgmr.msrb.gmra.mxu3 %v1811_v50  ;;  %v925_v50 = vsub.f32 %v923_v24, %v924_v29 }
 0x10f   :  { %1082 = vmatmul.f32.vlgmr.msra.gmra.mxu2 %v923_v24  ;;  %1087 = vmatpush.msra.mxu3 %v1735_v17 }
 0x110   :  { %1199 = vmatpush.msra.mxu1 %v1752_v10  ;;  %913 = vmatpush.msrb.mxu0 %v1866_v0  ;;  %v926_v17 = vand.u32 4294901760, %v925_v50 }
 0x111   :  { %814 = vmatmul.f32.vlgmr.msra.gmra.mxu0 %v2111_v20  ;;  %1089 = vmatpush.msra.mxu3 %v1743_v37  ;;  %v2112_v37 = vand.u32 4294901760, %v1748_v15  ;;  %v2115_v15 = vand.u32 4294901760, %v1788_v40 }
 0x112   :  { %1201 = vmatpush.msra.mxu1 %v1769_v1  ;;  %915 = vmatpush.msrb.mxu0 %v1880_v47 }
 0x113   :  { %1091 = vmatpush.msra.mxu3 %v1752_v10  ;;  %v2113_v10 = vand.u32 4294901760, %v1762_v22  ;;  %v2116_v22 = vand.u32 4294901760, %v1802_v2 }
 0x114   :  { %1203 = vmatpush.msra.mxu1 %v1780_v56  ;;  %917 = vmatpush.msrb.mxu0 %v1892_v33 }
 0x115   :  { %1093 = vmatpush.msra.mxu3 %v1769_v1  ;;  %v2114_v1 = vand.u32 4294901760, %v1774_v28  ;;  %v2117_v28 = vand.u32 4294901760, %v1819_v16 }
 0x116   :  { %1205 = vmatpush.msra.mxu1 %v2104_v43  ;;  %919 = vmatpush.msrb.mxu0 %v1906_v25 }
 0x117   :  { %1095 = vmatpush.msra.mxu3 %v1780_v56 }
 0x118   :  { %1207 = vmatpush.msra.mxu1 %v2106_v23  ;;  %921 = vmatpush.msrb.mxu0 %v1918_v27 }
 0x119   :  { %927 = vmatmul.f32.vlgmr.msrb.gmra.mxu0 %v926_v17  ;;  %1097 = vmatpush.msra.mxu3 %v2104_v43 }
 0x11a   :  { %1128 = vmatpush.msra.mxu0 %v2112_v37  ;;  %1209 = vmatpush.msra.mxu1 %v1823_v8 }
 0x11b   :  { %1099 = vmatpush.msra.mxu3 %v2106_v23 }
 0x11c   :  { %1132 = vmatpush.msra.mxu0 %v2113_v10  ;;  %1211 = vmatpush.msra.mxu1 %v1837_v62 }
 0x11d   :  { %1101 = vmatpush.msra.mxu3 %v1823_v8 }
 0x11e   :  { %1136 = vmatpush.msra.mxu0 %v2114_v1  ;;  %1213 = vmatpush.msra.mxu1 %v1847_v42 }
 0x11f   :  { %1103 = vmatpush.msra.mxu3 %v1837_v62 }
 0x120   :  { %1140 = vmatpush.msra.mxu0 %v2115_v15  ;;  %1215 = vmatpush.msra.mxu1 %v1856_v4 }
 0x121   :  { %1105 = vmatpush.msra.mxu3 %v1847_v42 }
 0x122   :  { %1144 = vmatpush.msra.mxu0 %v2116_v22  ;;  %1217 = vmatpush.msra.mxu1 %v1866_v0 }
 0x123   :  { %1107 = vmatpush.msra.mxu3 %v1856_v4 }
 0x124   :  { %1148 = vmatpush.msra.mxu0 %v2117_v28  ;;  %1219 = vmatpush.msra.mxu1 %v1880_v47 }
 0x125   :  { %1109 = vmatpush.msra.mxu3 %v1866_v0 }
 0x126   :  { %1152 = vmatpush.msra.mxu0 %v969_v7  ;;  %1221 = vmatpush.msra.mxu1 %v1892_v33 }
 0x127   :  { %1111 = vmatpush.msra.mxu3 %v1880_v47 }
 0x128   :  { %1156 = vmatpush.msra.mxu0 %v975_v59  ;;  %1223 = vmatpush.msra.mxu1 %v1906_v25 }
 0x129   :  { %1113 = vmatpush.msra.mxu3 %v1892_v33 }
 0x12a   :  { %1160 = vmatpush.msra.mxu0 %v981_v12  ;;  %1225 = vmatpush.msra.mxu1 %v1918_v27 }
 0x12b   :  { %1227 = vmatmul.f32.vlgmr.msra.gmra.mxu1 %v1981_v58  ;;  %1115 = vmatpush.msra.mxu3 %v1906_v25 }
 0x12c   :  { %1164 = vmatpush.msra.mxu0 %v987_v9 }
 0x12d   :  { %1117 = vmatpush.msra.mxu3 %v1918_v27 }
 0x12e   :  { %1168 = vmatpush.msra.mxu0 %v993_v49  ;;  %1121 = vmatmul.f32.vlgmr.msra.gmra.mxu3 %v924_v29 }
 0x130   :  { %1172 = vmatpush.msra.mxu0 %v999_v53 }
 0x132   :  { %1176 = vmatpush.msra.mxu0 %v1005_v48 }
 0x134   :  { %1180 = vmatpush.msra.mxu0 %v1011_v18 }
 0x136   :  { %1184 = vmatpush.msra.mxu0 %v1017_v36 }
 0x138   :  { %1188 = vmatpush.msra.mxu0 %v1023_v38 }
 0x139   :  { %1190 = vmatmul.f32.vlgmr.msra.gmra.mxu0 %v1981_v58 }
 0x163   :  { %v555_v62 = vpop.f32.mrf.mxu0 }
 0x165   :  { %v594_v60 = vpop.f32.mrf.mxu1 }
 0x167   :  { %v663_v16 = vpop.f32.mrf.mxu2 }
 0x16b   :  { %v733_v45 = vpop.f32.mrf.mxu0 }
 0x16f   :  { %v400_v56 = vpop.f32.mrf.mxu3  ;;  %v790_v7 = vpop.f32.mrf.mxu2 }
 0x173   :  { %v764_v35 = vpop.f32.mrf.mxu0 }
 0x177   :  { %v501_v40 = vpop.f32.mrf.mxu3 }
 0x178   :  { %v502_v2 = vadd.f32 %v501_v40, %v400_v56 }
 0x17a   :  { %v556_v8 = vadd.f32 %v555_v62, %v502_v2 }
 0x17c   :  { %v595_v42 = vadd.f32 %v594_v60, %v556_v8 }
 0x17e   :  { %v664_v4 = vadd.f32 %v663_v16, %v595_v42  ;;  %v842_v0 = vpop.f32.mrf.mxu1 }
 0x187   :  { %v1029_v33 = vpop.f32.mrf.mxu1 }
 0x189   :  { %v865_v11 = vpop.f32.mrf.mxu2 }
 0x18e   :  { %v815_v5 = vpop.f32.mrf.mxu0 }
 0x191   :  { %v700_v13 = vpop.f32.mrf.mxu3 }
 0x192   :  { %v701_v59 = vadd.f32 %v700_v13, %v664_v4  ;;  %v1083_v25 = vpop.f32.mrf.mxu2 }
 0x194   :  { %v734_v12 = vadd.f32 %v733_v45, %v701_v59 }
 0x196   :  { %v765_v47 = vadd.f32 %v764_v35, %v734_v12  ;;  %v928_v9 = vpop.f32.mrf.mxu0 }
 0x197   :  { %v1030_v49 = vadd.f32 %v1029_v33, %v928_v9 }
 0x198   :  { %v791_v55 = vadd.f32 %v790_v7, %v765_v47 }
 0x199   :  { %v1084_v44 = vadd.f32 %v1083_v25, %v1030_v49 }
 0x19a   :  { %v816_v6 = vadd.f32 %v815_v5, %v791_v55 }
 0x19c   :  { %v843_v48 = vadd.f32 %v842_v0, %v816_v6 }
 0x19e   :  { %v866_v36 = vadd.f32 %v865_v11, %v843_v48 }
 0x1a8   :  { %v1228_v34 = vpop.f32.mrf.mxu1 }
 0x1b1   :  { %v1122_v53 = vpop.f32.mrf.mxu3 }
 0x1b2   :  { %v1123_v27 = vadd.f32 %v1122_v53, %v1084_v44 }
 0x1b6   :  { %v1191_v31 = vpop.f32.mrf.mxu0 }
 0x1b7   :  { %v1192_v18 = vadd.f32 %v1191_v31, %v1123_v27 }
 0x1b9   :  { %v1229_v3 = vadd.f32 %v1228_v34, %v1192_v18 }
 0x1bb   :  { %v1231_v38 = vadd.f32 %v1229_v3, %v866_v36 }
 0x1bd   :  { %v1236_v57 = vadd.f32 %v1294_v30, %v1231_v38 }
 0x1bf   :  { %1237 = vst [vmem:[#allocation7] sm:$0xff] %v1236_v57 }
 0x1c0   :  { %1248 = dma.vmem_to_hbm [thread:$0]  %s1244_s13, 128, %s1246_s16, [#allocation4]  }
 0x1c1   :  { %1371 = dma.done.wait [#allocation4], 128  }
 0x1c2   :  { %1372 = vsyncadd [#allocation4], 4294967168 }
 0x1c3   :  { %1253 = vsyncpa [#allocation3], 1 }
 0x1c4   :  { %1254 = vsyncpa [#allocation6], 1 }
 0x1c5   :  { %1255 = vsyncpa [#allocation4], 1 }

</bundles_post_ra>
